<compile_context>
chip_gen: v5e
topology: v5e:2x2
jax: 0.10.0
libtpu: 0.0.40
codegen_flags: <defaults>
</compile_context>

<pallas_src>
import jax
import jax.numpy as jnp
from jax.experimental import pallas as pl
from jax.experimental.pallas import tpu as pltpu

SELU_ALPHA = 1.6732632423543772
SELU_SCALE = 1.0507009873554805


def _selu(v):
    # clamp exp argument so the unselected branch never produces inf
    return SELU_SCALE * jnp.where(
        v > 0, v, SELU_ALPHA * (jnp.exp(jnp.minimum(v, 0.0)) - 1.0))


def discriminator_kernel(x_ref, w1_ref, b1_ref, w2_ref, b2_ref,
                         w3_ref, b3_ref, wd_ref, bd_ref, out_ref):
    x = x_ref[...]  # [TB, F] f32

    def layer(h, w_ref, b_ref):
        # bf16 MXU operands, f32 accumulation; SELU on the f32 accumulator.
        acc = jnp.dot(h.astype(jnp.bfloat16), w_ref[...],
                      preferred_element_type=jnp.float32) + b_ref[...]
        return _selu(acc)

    h = layer(x, w1_ref, b1_ref)   # fc1 (+ Dropout == identity at eval)
    h = layer(h, w2_ref, b2_ref)   # fc2
    h = layer(h, w3_ref, b3_ref)   # fc3

    # Folded classifier: d = logit_1 - logit_0 = h . (wc[:,1]-wc[:,0]) + (bc1-bc0)
    # VPU multiply + XLU lane-reduce, all in f32 (no padded 128-col weights).
    d = jnp.sum(h * wd_ref[...], axis=1, keepdims=True) + bd_ref[...]  # [TB, 1]

    # Explicit 2-class log-softmax (no cross-lane max/sum on a wide slab):
    #   sp   = softplus(d) = max(d,0) + log(1 + exp(-|d|))   (stable)
    #   out0 = -sp ; out1 = d - sp
    sp = jnp.maximum(d, 0.0) + jnp.log(1.0 + jnp.exp(-jnp.abs(d)))

    col = jax.lax.broadcasted_iota(jnp.int32, out_ref.shape, 1)  # [TB, 2]
    out_ref[...] = jnp.where(col == 0, -sp, d - sp).astype(out_ref.dtype)


def _choose_tiling(B, tb_max):
    """Pad batch only to a multiple of 8; keep the grid even when > 1 tile."""
    bp8 = ((B + 7) // 8) * 8
    if bp8 <= tb_max:
        return bp8, bp8, 1                 # single tile covering the whole batch
    n_tiles = pl.cdiv(bp8, tb_max)
    if n_tiles % 2:                        # even grid keeps both v7x TCs busy
        n_tiles += 1
    tb = ((pl.cdiv(bp8, n_tiles) + 7) // 8) * 8   # multiple of 8 rows
    bp = n_tiles * tb
    return bp, tb, n_tiles


def discriminator_forward(features, params, *, tb_max=1024):
    """features: [B, input_size+1] f32; params: bf16 [in,out] weights, f32 biases."""
    B, F = features.shape
    H2 = params["w1"].shape[1]

    bp, tb, n_tiles = _choose_tiling(B, tb_max)
    if bp != B:
        features = jnp.pad(features, ((0, bp - B), (0, 0)))

    x_spec = pl.BlockSpec((tb, F), lambda i: (i, 0))
    out_spec = pl.BlockSpec((tb, 2), lambda i: (i, 0))

    def resident(arr):  # full-array block, constant index map -> stays in VMEM
        return pl.BlockSpec(arr.shape, lambda i: (0, 0))

    args = (features,
            params["w1"], params["b1"],
            params["w2"], params["b2"],
            params["w3"], params["b3"],
            params["wd"], params["bd"])
    in_specs = [x_spec] + [resident(a) for a in args[1:]]

    flops = 2 * bp * (F * H2 + 2 * H2 * H2 + H2)
    transcendentals = 3 * bp * H2 + 2 * bp
    bytes_accessed = (features.size * features.dtype.itemsize
                      + sum(int(p.size) * p.dtype.itemsize for p in params.values())
                      + bp * 2 * 4)

    out = pl.pallas_call(
        discriminator_kernel,
        out_shape=jax.ShapeDtypeStruct((bp, 2), jnp.float32),
        grid=(n_tiles,),
        in_specs=in_specs,
        out_specs=out_spec,
        compiler_params=pltpu.CompilerParams(
            dimension_semantics=("parallel",)),
        cost_estimate=pl.CostEstimate(
            flops=flops,
            transcendentals=transcendentals,
            bytes_accessed=bytes_accessed),
    )(*args)

    return out[:B]


def init_params(key, input_size, hidden_size):
    """Deterministic synthetic parameters.

    Hidden weights are stored pre-transposed as [in, out] in bf16 (MXU
    operands); biases stay f32.  The classifier is pre-folded to the class
    difference: wd = wc[:,1]-wc[:,0] (f32 row), bd = bc[1]-bc[0] (f32 scalar).
    """
    h2 = hidden_size * 2
    dims = [
        ("w1", (input_size + 1, h2)), ("b1", (1, h2)),
        ("w2", (h2, h2)),             ("b2", (1, h2)),
        ("w3", (h2, h2)),             ("b3", (1, h2)),
        ("wc", (h2, 2)),              ("bc", (1, 2)),
    ]
    raw = {}
    keys = jax.random.split(key, len(dims))
    for k, (name, shape) in zip(keys, dims):
        raw[name] = (0.1 * jax.random.normal(k, shape)).astype(jnp.float32)

    params = {}
    for name in ("w1", "w2", "w3"):
        params[name] = raw[name].astype(jnp.bfloat16)
    for name in ("b1", "b2", "b3"):
        params[name] = raw[name]
    # fold the 2-class classifier into a single difference column (f32)
    params["wd"] = (raw["wc"][:, 1] - raw["wc"][:, 0]).reshape(1, h2)
    params["bd"] = (raw["bc"][:, 1] - raw["bc"][:, 0]).reshape(1, 1)
    return params


def reference_forward(features, p):
    """Pure-JAX reference mirroring the kernel's bf16-operand / f32-accum math."""
    def layer(h, w, b):
        return _selu(jnp.dot(h.astype(jnp.bfloat16), w,
                             preferred_element_type=jnp.float32) + b)
    h = layer(features, p["w1"], p["b1"])
    h = layer(h, p["w2"], p["b2"])
    h = layer(h, p["w3"], p["b3"])
    d = jnp.sum(h * p["wd"], axis=1, keepdims=True) + p["bd"]     # [B, 1]
    # log_softmax is shift-invariant: log_softmax([l0, l1]) == log_softmax([0, d])
    logits = jnp.concatenate([jnp.zeros_like(d), d], axis=1)
    return jax.nn.log_softmax(logits, axis=1)


if __name__ == "__main__":
    input_size = 31    # features carry input_size + 1 columns => 32
    hidden_size = 32   # hidden_size * 2 = 64
    batch = 200        # not a multiple of 128; 200 % 8 == 0 -> single 200-row tile

    key = jax.random.PRNGKey(0)
    k_x, k_p = jax.random.split(key)
    features = jax.random.normal(k_x, (batch, input_size + 1), dtype=jnp.float32)
    params = init_params(k_p, input_size, hidden_size)

    out = discriminator_forward(features, params)
    out = jax.block_until_ready(out)

    ref = reference_forward(features, params)
    assert out.shape == (batch, 2)
    assert jnp.allclose(out, ref, atol=1e-3, rtol=1e-3), "mismatch vs reference"
    # log-softmax sanity: each row's exp() should sum to ~1
    assert jnp.allclose(jnp.sum(jnp.exp(out), axis=1), 1.0, atol=1e-3)

    print("KERNEL_OK")
</pallas_src>

<mosaic_0001>
module attributes {stable_mosaic.version = 11 : i64} {
  func.func @discriminator_kernel(%arg0: i32, %arg1: memref<200x32xf32, #tpu.memory_space<vmem>>, %arg2: memref<32x64xbf16, #tpu.memory_space<vmem>>, %arg3: memref<1x64xf32, #tpu.memory_space<vmem>>, %arg4: memref<64x64xbf16, #tpu.memory_space<vmem>>, %arg5: memref<1x64xf32, #tpu.memory_space<vmem>>, %arg6: memref<64x64xbf16, #tpu.memory_space<vmem>>, %arg7: memref<1x64xf32, #tpu.memory_space<vmem>>, %arg8: memref<1x64xf32, #tpu.memory_space<vmem>>, %arg9: memref<1x1xf32, #tpu.memory_space<vmem>>, %arg10: memref<200x2xf32, #tpu.memory_space<vmem>>) attributes {dimension_semantics = [#tpu.dimension_semantics<parallel>], iteration_bounds = array<i64: 1>, scalar_prefetch = 0 : i64, scratch_operands = 0 : i64, tpu.core_type = #tpu.core_type<tc>, window_params = [{transform_indices = @transform_0, window_bounds = array<i64: 200, 32>}, {pipeline_mode = #tpu.pipeline_mode<synchronous>, transform_indices = @transform_1, window_bounds = array<i64: 32, 64>}, {pipeline_mode = #tpu.pipeline_mode<synchronous>, transform_indices = @transform_2, window_bounds = array<i64: 1, 64>}, {pipeline_mode = #tpu.pipeline_mode<synchronous>, transform_indices = @transform_3, window_bounds = array<i64: 64, 64>}, {pipeline_mode = #tpu.pipeline_mode<synchronous>, transform_indices = @transform_4, window_bounds = array<i64: 1, 64>}, {pipeline_mode = #tpu.pipeline_mode<synchronous>, transform_indices = @transform_5, window_bounds = array<i64: 64, 64>}, {pipeline_mode = #tpu.pipeline_mode<synchronous>, transform_indices = @transform_6, window_bounds = array<i64: 1, 64>}, {pipeline_mode = #tpu.pipeline_mode<synchronous>, transform_indices = @transform_7, window_bounds = array<i64: 1, 64>}, {pipeline_mode = #tpu.pipeline_mode<synchronous>, transform_indices = @transform_8, window_bounds = array<i64: 1, 1>}, {transform_indices = @transform_9, window_bounds = array<i64: 200, 2>}]} {
    %c0 = arith.constant 0 : index
    %c0_0 = arith.constant 0 : index
    %0 = vector.load %arg1[%c0, %c0_0] : memref<200x32xf32, #tpu.memory_space<vmem>>, vector<200x32xf32>
    %1 = arith.truncf %0 : vector<200x32xf32> to vector<200x32xbf16>
    %c0_1 = arith.constant 0 : index
    %c0_2 = arith.constant 0 : index
    %2 = vector.load %arg2[%c0_1, %c0_2] : memref<32x64xbf16, #tpu.memory_space<vmem>>, vector<32x64xbf16>
    %cst = arith.constant dense<0.000000e+00> : vector<200x64xf32>
    %3 = tpu.matmul %1, %2, %cst {dimension_numbers = #tpu.dot_dimension_numbers<[1], [0], [0], [1], [0, 0, 1, 1], [], []>} : vector<200x32xbf16>, vector<32x64xbf16>, vector<200x64xf32> -> vector<200x64xf32>
    %c0_3 = arith.constant 0 : index
    %c0_4 = arith.constant 0 : index
    %4 = vector.load %arg3[%c0_3, %c0_4] : memref<1x64xf32, #tpu.memory_space<vmem>>, vector<1x64xf32>
    %5 = vector.broadcast %4 : vector<1x64xf32> to vector<200x64xf32>
    %6 = arith.addf %3, %5 : vector<200x64xf32>
    %cst_5 = arith.constant 0.000000e+00 : f32
    %7 = vector.broadcast %cst_5 : f32 to vector<200x64xf32>
    %8 = arith.cmpf ogt, %6, %7 : vector<200x64xf32>
    %cst_6 = arith.constant 0.000000e+00 : f32
    %9 = vector.broadcast %cst_6 : f32 to vector<200x64xf32>
    %10 = arith.minimumf %6, %9 : vector<200x64xf32>
    %11 = math.exp %10 : vector<200x64xf32>
    %cst_7 = arith.constant 1.000000e+00 : f32
    %12 = vector.broadcast %cst_7 : f32 to vector<200x64xf32>
    %13 = arith.subf %11, %12 : vector<200x64xf32>
    %cst_8 = arith.constant 1.67326319 : f32
    %14 = vector.broadcast %cst_8 : f32 to vector<200x64xf32>
    %15 = arith.mulf %14, %13 : vector<200x64xf32>
    %16 = arith.select %8, %6, %15 : vector<200x64xi1>, vector<200x64xf32>
    %cst_9 = arith.constant 1.05070102 : f32
    %17 = vector.broadcast %cst_9 : f32 to vector<200x64xf32>
    %18 = arith.mulf %17, %16 : vector<200x64xf32>
    %19 = arith.truncf %18 : vector<200x64xf32> to vector<200x64xbf16>
    %c0_10 = arith.constant 0 : index
    %c0_11 = arith.constant 0 : index
    %20 = vector.load %arg4[%c0_10, %c0_11] : memref<64x64xbf16, #tpu.memory_space<vmem>>, vector<64x64xbf16>
    %cst_12 = arith.constant dense<0.000000e+00> : vector<200x64xf32>
    %21 = tpu.matmul %19, %20, %cst_12 {dimension_numbers = #tpu.dot_dimension_numbers<[1], [0], [0], [1], [0, 0, 1, 1], [], []>} : vector<200x64xbf16>, vector<64x64xbf16>, vector<200x64xf32> -> vector<200x64xf32>
    %c0_13 = arith.constant 0 : index
    %c0_14 = arith.constant 0 : index
    %22 = vector.load %arg5[%c0_13, %c0_14] : memref<1x64xf32, #tpu.memory_space<vmem>>, vector<1x64xf32>
    %23 = vector.broadcast %22 : vector<1x64xf32> to vector<200x64xf32>
    %24 = arith.addf %21, %23 : vector<200x64xf32>
    %cst_15 = arith.constant 0.000000e+00 : f32
    %25 = vector.broadcast %cst_15 : f32 to vector<200x64xf32>
    %26 = arith.cmpf ogt, %24, %25 : vector<200x64xf32>
    %cst_16 = arith.constant 0.000000e+00 : f32
    %27 = vector.broadcast %cst_16 : f32 to vector<200x64xf32>
    %28 = arith.minimumf %24, %27 : vector<200x64xf32>
    %29 = math.exp %28 : vector<200x64xf32>
    %cst_17 = arith.constant 1.000000e+00 : f32
    %30 = vector.broadcast %cst_17 : f32 to vector<200x64xf32>
    %31 = arith.subf %29, %30 : vector<200x64xf32>
    %cst_18 = arith.constant 1.67326319 : f32
    %32 = vector.broadcast %cst_18 : f32 to vector<200x64xf32>
    %33 = arith.mulf %32, %31 : vector<200x64xf32>
    %34 = arith.select %26, %24, %33 : vector<200x64xi1>, vector<200x64xf32>
    %cst_19 = arith.constant 1.05070102 : f32
    %35 = vector.broadcast %cst_19 : f32 to vector<200x64xf32>
    %36 = arith.mulf %35, %34 : vector<200x64xf32>
    %37 = arith.truncf %36 : vector<200x64xf32> to vector<200x64xbf16>
    %c0_20 = arith.constant 0 : index
    %c0_21 = arith.constant 0 : index
    %38 = vector.load %arg6[%c0_20, %c0_21] : memref<64x64xbf16, #tpu.memory_space<vmem>>, vector<64x64xbf16>
    %cst_22 = arith.constant dense<0.000000e+00> : vector<200x64xf32>
    %39 = tpu.matmul %37, %38, %cst_22 {dimension_numbers = #tpu.dot_dimension_numbers<[1], [0], [0], [1], [0, 0, 1, 1], [], []>} : vector<200x64xbf16>, vector<64x64xbf16>, vector<200x64xf32> -> vector<200x64xf32>
    %c0_23 = arith.constant 0 : index
    %c0_24 = arith.constant 0 : index
    %40 = vector.load %arg7[%c0_23, %c0_24] : memref<1x64xf32, #tpu.memory_space<vmem>>, vector<1x64xf32>
    %41 = vector.broadcast %40 : vector<1x64xf32> to vector<200x64xf32>
    %42 = arith.addf %39, %41 : vector<200x64xf32>
    %cst_25 = arith.constant 0.000000e+00 : f32
    %43 = vector.broadcast %cst_25 : f32 to vector<200x64xf32>
    %44 = arith.cmpf ogt, %42, %43 : vector<200x64xf32>
    %cst_26 = arith.constant 0.000000e+00 : f32
    %45 = vector.broadcast %cst_26 : f32 to vector<200x64xf32>
    %46 = arith.minimumf %42, %45 : vector<200x64xf32>
    %47 = math.exp %46 : vector<200x64xf32>
    %cst_27 = arith.constant 1.000000e+00 : f32
    %48 = vector.broadcast %cst_27 : f32 to vector<200x64xf32>
    %49 = arith.subf %47, %48 : vector<200x64xf32>
    %cst_28 = arith.constant 1.67326319 : f32
    %50 = vector.broadcast %cst_28 : f32 to vector<200x64xf32>
    %51 = arith.mulf %50, %49 : vector<200x64xf32>
    %52 = arith.select %44, %42, %51 : vector<200x64xi1>, vector<200x64xf32>
    %cst_29 = arith.constant 1.05070102 : f32
    %53 = vector.broadcast %cst_29 : f32 to vector<200x64xf32>
    %54 = arith.mulf %53, %52 : vector<200x64xf32>
    %c0_30 = arith.constant 0 : index
    %c0_31 = arith.constant 0 : index
    %55 = vector.load %arg8[%c0_30, %c0_31] : memref<1x64xf32, #tpu.memory_space<vmem>>, vector<1x64xf32>
    %56 = vector.broadcast %55 : vector<1x64xf32> to vector<200x64xf32>
    %57 = arith.mulf %54, %56 : vector<200x64xf32>
    %cst_32 = arith.constant dense<0.000000e+00> : vector<200xf32>
    %58 = vector.multi_reduction <add>, %57, %cst_32 [1] : vector<200x64xf32> to vector<200xf32>
    %59 = vector.shape_cast %58 : vector<200xf32> to vector<200x1xf32>
    %c0_33 = arith.constant 0 : index
    %c0_34 = arith.constant 0 : index
    %60 = vector.load %arg9[%c0_33, %c0_34] : memref<1x1xf32, #tpu.memory_space<vmem>>, vector<1x1xf32>
    %61 = vector.broadcast %60 : vector<1x1xf32> to vector<200x1xf32>
    %62 = arith.addf %59, %61 : vector<200x1xf32>
    %cst_35 = arith.constant 0.000000e+00 : f32
    %63 = vector.broadcast %cst_35 : f32 to vector<200x1xf32>
    %64 = arith.maximumf %62, %63 : vector<200x1xf32>
    %65 = math.absf %62 : vector<200x1xf32>
    %cst_36 = arith.constant 0.000000e+00 : f32
    %66 = vector.broadcast %cst_36 : f32 to vector<200x1xf32>
    %67 = arith.subf %66, %65 : vector<200x1xf32>
    %68 = math.exp %67 : vector<200x1xf32>
    %cst_37 = arith.constant 1.000000e+00 : f32
    %69 = vector.broadcast %cst_37 : f32 to vector<200x1xf32>
    %70 = arith.addf %69, %68 : vector<200x1xf32>
    %71 = math.log %70 : vector<200x1xf32>
    %72 = arith.addf %64, %71 : vector<200x1xf32>
    %73 = tpu.iota {dimensions = array<i32: 1>} : vector<200x2xi32>
    %c0_i32 = arith.constant 0 : i32
    %74 = vector.broadcast %c0_i32 : i32 to vector<200x2xi32>
    %75 = arith.cmpi eq, %73, %74 : vector<200x2xi32>
    %cst_38 = arith.constant 0.000000e+00 : f32
    %76 = vector.broadcast %cst_38 : f32 to vector<200x1xf32>
    %77 = arith.subf %76, %72 : vector<200x1xf32>
    %78 = arith.subf %62, %72 : vector<200x1xf32>
    %79 = vector.shape_cast %77 : vector<200x1xf32> to vector<200x1xf32>
    %80 = vector.broadcast %79 : vector<200x1xf32> to vector<200x2xf32>
    %81 = vector.shape_cast %78 : vector<200x1xf32> to vector<200x1xf32>
    %82 = vector.broadcast %81 : vector<200x1xf32> to vector<200x2xf32>
    %83 = arith.select %75, %80, %82 : vector<200x2xi1>, vector<200x2xf32>
    %c0_39 = arith.constant 0 : index
    %c0_40 = arith.constant 0 : index
    %84 = vector.load %arg10[%c0_39, %c0_40] : memref<200x2xf32, #tpu.memory_space<vmem>>, vector<200x2xf32>
    tpu.vector_store %arg10[%c0_39, %c0_40], %83 {strides = array<i32>} : memref<200x2xf32, #tpu.memory_space<vmem>>, vector<200x2xf32>,
    return
  }
  func.func @transform_0(%arg0: i32) -> (i32, i32) {
    %c0_i32 = arith.constant 0 : i32
    %c0_i32_0 = arith.constant 0 : i32
    return %arg0, %c0_i32 : i32, i32
  }
  func.func @transform_1(%arg0: i32) -> (i32, i32) {
    %c0_i32 = arith.constant 0 : i32
    %c0_i32_0 = arith.constant 0 : i32
    %c0_i32_1 = arith.constant 0 : i32
    return %c0_i32, %c0_i32_0 : i32, i32
  }
  func.func @transform_2(%arg0: i32) -> (i32, i32) {
    %c0_i32 = arith.constant 0 : i32
    %c0_i32_0 = arith.constant 0 : i32
    %c0_i32_1 = arith.constant 0 : i32
    return %c0_i32, %c0_i32_0 : i32, i32
  }
  func.func @transform_3(%arg0: i32) -> (i32, i32) {
    %c0_i32 = arith.constant 0 : i32
    %c0_i32_0 = arith.constant 0 : i32
    %c0_i32_1 = arith.constant 0 : i32
    return %c0_i32, %c0_i32_0 : i32, i32
  }
  func.func @transform_4(%arg0: i32) -> (i32, i32) {
    %c0_i32 = arith.constant 0 : i32
    %c0_i32_0 = arith.constant 0 : i32
    %c0_i32_1 = arith.constant 0 : i32
    return %c0_i32, %c0_i32_0 : i32, i32
  }
  func.func @transform_5(%arg0: i32) -> (i32, i32) {
    %c0_i32 = arith.constant 0 : i32
    %c0_i32_0 = arith.constant 0 : i32
    %c0_i32_1 = arith.constant 0 : i32
    return %c0_i32, %c0_i32_0 : i32, i32
  }
  func.func @transform_6(%arg0: i32) -> (i32, i32) {
    %c0_i32 = arith.constant 0 : i32
    %c0_i32_0 = arith.constant 0 : i32
    %c0_i32_1 = arith.constant 0 : i32
    return %c0_i32, %c0_i32_0 : i32, i32
  }
  func.func @transform_7(%arg0: i32) -> (i32, i32) {
    %c0_i32 = arith.constant 0 : i32
    %c0_i32_0 = arith.constant 0 : i32
    %c0_i32_1 = arith.constant 0 : i32
    return %c0_i32, %c0_i32_0 : i32, i32
  }
  func.func @transform_8(%arg0: i32) -> (i32, i32) {
    %c0_i32 = arith.constant 0 : i32
    %c0_i32_0 = arith.constant 0 : i32
    %c0_i32_1 = arith.constant 0 : i32
    return %c0_i32, %c0_i32_0 : i32, i32
  }
  func.func @transform_9(%arg0: i32) -> (i32, i32) {
    %c0_i32 = arith.constant 0 : i32
    %c0_i32_0 = arith.constant 0 : i32
    return %arg0, %c0_i32 : i32, i32
  }
}

</mosaic_0001>

<bundles_post_ra>
// kernel: tpu_custom_call.1
= control target key start
LH: loop header
LB: loop body
LE: loop exit
PB: predicated region body
PF: predicated region fallthrough
CT: control target
= control target key end

     0   :  { %vm93_vm0 = vcmask 261120   ;;  %vm455_vm4 = vcmask 523264   ;;  %s3008_s1 = inlined_call_operand.vmem [shape: bf16[32,64], index: 1, kind: input, shape index: {}]   ;;  %s3009_s0 = inlined_call_operand.vmem [shape: f32[200,32], index: 0, kind: input, shape index: {}]   ;;  %s3010_s2 = inlined_call_operand.vmem [shape: f32[1,64], index: 2, kind: input, shape index: {}]   ;;  %s3011_s3 = inlined_call_operand.vmem [shape: bf16[64,64], index: 3, kind: input, shape index: {}]   ;;  %s3012_s4 = inlined_call_operand.vmem [shape: f32[1,64], index: 4, kind: input, shape index: {}]   ;;  %s3013_s5 = inlined_call_operand.vmem [shape: bf16[64,64], index: 5, kind: input, shape index: {}]   ;;  %s3014_s6 = inlined_call_operand.vmem [shape: f32[1,64], index: 6, kind: input, shape index: {}]   ;;  %s3015_s7 = inlined_call_operand.vmem [shape: f32[1,64], index: 7, kind: input, shape index: {}]   ;;  %s3016_s8 = inlined_call_operand.<no memory space> [shape: f32[1,1], index: 8, kind: input, shape index: {}]   ;;  %s3017_s9 = inlined_call_operand.vmem [shape: f32[200,2], index: 9, kind: output, shape index: {}]  }
   0x1   :  { %v2000_v0 = vld [vmem:[%s3008_s1 + $0x8] sm:$0xff]  ;;  %v1999_v1 = vld [vmem:[%s3008_s1] sm:$0xff]  ;;  %v37_v8 = vld [vmem:[%s3009_s0 + $0x10] sm:$0xff] }
   0x2   :  { %v35_v2 = vld [vmem:[%s3009_s0] sm:$0xff]  ;;  %139 = vmatpush.bf16.msra.mxu0 %v2000_v0  ;;  %2009 = vmatpush.bf16.msra.mxu3 %v2000_v0  ;;  %v36_v3 = vld [vmem:[%s3009_s0 + $0x8] sm:$0xff]  ;;  %v38_v9 = vld [vmem:[%s3009_s0 + $0x18] sm:$0xff] }
   0x3   :  { %v55_v4 = vld [vmem:[%s3009_s0 + $0xa0] sm:$0xff]  ;;  %v56_v5 = vld [vmem:[%s3009_s0 + $0xa8] sm:$0xff]  ;;  %v60_v6 = vpack.c.bf16 %v36_v3, %v35_v2  ;;  %v57_v10 = vld [vmem:[%s3009_s0 + $0xb0] sm:$0xff]  ;;  %v61_v12 = vpack.c.bf16 %v38_v9, %v37_v8 }
   0x4   :  { %v70_v7 = vpack.c.bf16 %v56_v5, %v55_v4  ;;  %v58_v11 = vld [vmem:[%s3009_s0 + $0xb8] sm:$0xff]  ;;  %v39_v14 = vld [vmem:[%s3009_s0 + $0x20] sm:$0xff]  ;;  %v40_v15 = vld [vmem:[%s3009_s0 + $0x28] sm:$0xff] }
   0x5   :  { %v71_v13 = vpack.c.bf16 %v58_v11, %v57_v10  ;;  %v59_v16 = vld [vmem:[%s3009_s0 + $0xc0] sm:$0xff]  ;;  %v62_v17 = vpack.c.bf16 %v40_v15, %v39_v14  ;;  %v41_v19 = vld [vmem:[%s3009_s0 + $0x30] sm:$0xff]  ;;  %v42_v20 = vld [vmem:[%s3009_s0 + $0x38] sm:$0xff] }
   0x6   :  { %140 = vmatpush.bf16.msra.mxu0 %v1999_v1  ;;  %2010 = vmatpush.bf16.msra.mxu3 %v1999_v1  ;;  %v72_v18 = vpack.c.bf16 %v59_v16, %v59_v16  ;;  %v63_v21 = vpack.c.bf16 %v42_v20, %v41_v19  ;;  %v43_v22 = vld [vmem:[%s3009_s0 + $0x40] sm:$0xff]  ;;  %v44_v23 = vld [vmem:[%s3009_s0 + $0x48] sm:$0xff]  ;;  %v45_v25 = vld [vmem:[%s3009_s0 + $0x50] sm:$0xff] }
   0x7   :  { %v64_v24 = vpack.c.bf16 %v44_v23, %v43_v22  ;;  %v46_v26 = vld [vmem:[%s3009_s0 + $0x58] sm:$0xff]  ;;  %v47_v28 = vld [vmem:[%s3009_s0 + $0x60] sm:$0xff]  ;;  %v48_v29 = vld [vmem:[%s3009_s0 + $0x68] sm:$0xff] }
   0x8   :  { %v65_v27 = vpack.c.bf16 %v46_v26, %v45_v25  ;;  %v66_v30 = vpack.c.bf16 %v48_v29, %v47_v28  ;;  %v49_v31 = vld [vmem:[%s3009_s0 + $0x70] sm:$0xff]  ;;  %v50_v32 = vld [vmem:[%s3009_s0 + $0x78] sm:$0xff]  ;;  %v2002_v36 = vld [vmem:[%s3011_s3 + $0x8] sm:$0xff] }
   0x9   :  { %1853 = vmatmul.msk.bf16.vlgmr.msra.gmra.mxu0 %vm93_vm0, %v60_v6  ;;  %1863 = vmatmul.msk.bf16.vlgmr.msra.gmra.mxu3 %vm93_vm0, %v70_v7  ;;  %v2004_v33 = vld [vmem:[%s3011_s3 + $0x18] sm:$0xff]  ;;  %v67_v34 = vpack.c.bf16 %v50_v32, %v49_v31  ;;  %v2003_v35 = vld [vmem:[%s3011_s3 + $0x10] sm:$0xff]  ;;  %v2001_v37 = vld [vmem:[%s3011_s3] sm:$0xff] }
   0xa   :  { %499 = vmatpush.bf16.msra.mxu1 %v2004_v33  ;;  %2011 = vmatpush.bf16.msrb.mxu3 %v2004_v33  ;;  %v51_v38 = vld [vmem:[%s3009_s0 + $0x80] sm:$0xff]  ;;  %v52_v39 = vld [vmem:[%s3009_s0 + $0x88] sm:$0xff]  ;;  %v53_v53 = vld [vmem:[%s3009_s0 + $0x90] sm:$0xff] }
   0xb   :  { %v2430_v40 = vld [vmem:[%s3010_s2] ss:$0 sm:$0xff]  ;;  %v68_v41 = vpack.c.bf16 %v52_v39, %v51_v38  ;;  %v54_v54 = vld [vmem:[%s3009_s0 + $0x98] sm:$0xff] }
   0xc   :  { %v69_v60 = vpack.c.bf16 %v54_v54, %v53_v53 }
   0xe   :  { %500 = vmatpush.bf16.msra.mxu1 %v2003_v35  ;;  %2012 = vmatpush.bf16.msrb.mxu3 %v2003_v35 }
  0x12   :  { %501 = vmatpush.bf16.msra.mxu1 %v2002_v36  ;;  %2013 = vmatpush.bf16.msrb.mxu3 %v2002_v36 }
  0x16   :  { %502 = vmatpush.bf16.msra.mxu1 %v2001_v37  ;;  %2014 = vmatpush.bf16.msrb.mxu3 %v2001_v37 }
  0x19   :  { %1854 = vmatmul.msk.bf16.gmra.mxu0 %vm93_vm0, %v61_v12  ;;  %1864 = vmatmul.msk.bf16.gmra.mxu3 %vm93_vm0, %v71_v13 }
  0x29   :  { %1855 = vmatmul.msk.bf16.gmra.mxu0 %vm93_vm0, %v62_v17  ;;  %1865 = vmatmul.msk.bf16.gmra.mxu3 %vm93_vm0, %v72_v18 }
  0x39   :  { %1856 = vmatmul.msk.bf16.gmra.mxu0 %vm93_vm0, %v63_v21 }
  0x49   :  { %1857 = vmatmul.msk.bf16.gmra.mxu0 %vm93_vm0, %v64_v24 }
  0x59   :  { %1858 = vmatmul.msk.bf16.gmra.mxu0 %vm93_vm0, %v65_v27 }
  0x69   :  { %1859 = vmatmul.msk.bf16.gmra.mxu0 %vm93_vm0, %v66_v30 }
  0x79   :  { %1860 = vmatmul.msk.bf16.gmra.mxu0 %vm93_vm0, %v67_v34 }
  0x86   :  { %v142_v42 = vpop.f32.mrf.mxu0 }
  0x87   :  { %v143_v43 = vadd.f32 %v2430_v40, %v142_v42 }
  0x89   :  { %v231_v44 = vmin.f32 %v143_v43, 0.0  ;;  %1861 = vmatmul.msk.bf16.gmra.mxu0 %vm93_vm0, %v68_v41  ;;  %vm206_vm1 = vcmp.gt.f32.partialorder %v143_v43, 0.0 }
  0x8b   :  { %v256_v45 = vmul.f32 1.442695, %v231_v44 }
  0x8c   :  { %v192_v46 = vpop.f32.mrf.mxu3 }
  0x8d   :  { %2028 = vpow2.f32 %v256_v45  ;;  %v193_v47 = vadd.f32 %v2430_v40, %v192_v46 }
  0x8e   :  { %v144_v48 = vpop.f32.mrf.mxu0 }
  0x8f   :  { %v251_v49 = vmin.f32 %v193_v47, 0.0  ;;  %v145_v50 = vadd.f32 %v2430_v40, %v144_v48  ;;  %vm226_vm2 = vcmp.gt.f32.partialorder %v193_v47, 0.0 }
  0x91   :  { %v296_v51 = vmul.f32 1.442695, %v251_v49  ;;  %v232_v52 = vmin.f32 %v145_v50, 0.0  ;;  %vm207_vm3 = vcmp.gt.f32.partialorder %v145_v50, 0.0 }
  0x93   :  { %v2029_v55 = vpop.eup %2028  ;;  %2030 = vpow2.f32 %v296_v51  ;;  %v258_v56 = vmul.f32 1.442695, %v232_v52 }
  0x94   :  { %v194_v57 = vpop.f32.mrf.mxu3  ;;  %v1866_v58 = vadd.f32 -1.0, %v2029_v55 }
  0x95   :  { %2032 = vpow2.f32 %v258_v56  ;;  %v195_v59 = vadd.f32 %v2430_v40, %v194_v57 }
  0x96   :  { %v147_v61 = vpop.f32.mrf.mxu0  ;;  %v331_v1 = vmul.f32 1.6732632, %v1866_v58 }
  0x97   :  { %v252_v62 = vmin.f32 %v195_v59, 0.0  ;;  %v2444_v63 = vadd.f32 %v2430_v40, %v147_v61  ;;  %vm227_vm5 = vcmp.gt.f32.partialorder %v195_v59, 0.0 }
  0x98   :  { %v356_v9 = vsel %vm206_vm1, %v143_v43, %v331_v1 }
  0x99   :  { %v2031_v0 = vpop.eup %2030  ;;  %v298_v2 = vmul.f32 1.442695, %v252_v62  ;;  %v233_v3 = vmin.f32 %v2444_v63, 0.0  ;;  %1862 = vmatmul.msk.bf16.gmra.mxu0 %vm93_vm0, %v69_v60  ;;  %v381_v16 = vmul.f32 1.050701, %v356_v9  ;;  %vm208_vm6 = vcmp.gt.f32.partialorder %v2444_v63, 0.0 }
  0x9a   :  { %v1886_v4 = vadd.f32 -1.0, %v2031_v0 }
  0x9b   :  { %v2033_v5 = vpop.eup %2032  ;;  %2034 = vpow2.f32 %v298_v2  ;;  %v260_v6 = vmul.f32 1.442695, %v233_v3 }
  0x9c   :  { %v1867_v7 = vadd.f32 -1.0, %v2033_v5  ;;  %v197_v8 = vpop.f32.mrf.mxu3  ;;  %v351_v11 = vmul.f32 1.6732632, %v1886_v4 }
  0x9d   :  { %2036 = vpow2.f32 %v260_v6  ;;  %v2449_v10 = vadd.f32 %v2430_v40, %v197_v8 }
  0x9e   :  { %v332_v12 = vmul.f32 1.6732632, %v1867_v7  ;;  %v149_v13 = vpop.f32.mrf.mxu0  ;;  %v376_v22 = vsel %vm226_vm2, %v193_v47, %v351_v11 }
  0x9f   :  { %v253_v14 = vmin.f32 %v2449_v10, 0.0  ;;  %v150_v15 = vadd.f32 %v2430_v40, %v149_v13  ;;  %v401_v29 = vmul.f32 1.050701, %v376_v22  ;;  %vm228_vm7 = vcmp.gt.f32.partialorder %v2449_v10, 0.0 }
  0xa0   :  { %v357_v17 = vsel %vm207_vm3, %v145_v50, %v332_v12 }
  0xa1   :  { %v2035_v18 = vpop.eup %2034  ;;  %v382_v19 = vmul.f32 1.050701, %v357_v17  ;;  %v300_v20 = vmul.f32 1.442695, %v253_v14  ;;  %v234_v21 = vmin.f32 %v150_v15, 0.0  ;;  %vm209_vm8 = vcmp.gt.f32.partialorder %v150_v15, 0.0 }
  0xa2   :  { %v1887_v23 = vadd.f32 -1.0, %v2035_v18 }
  0xa3   :  { %v2037_v24 = vpop.eup %2036  ;;  %2038 = vpow2.f32 %v300_v20  ;;  %v262_v25 = vmul.f32 1.442695, %v234_v21  ;;  %v406_v26 = vpack.c.bf16 %v382_v19, %v381_v16 }
  0xa4   :  { %v352_v27 = vmul.f32 1.6732632, %v1887_v23  ;;  %v199_v28 = vpop.f32.mrf.mxu3  ;;  %v1868_v30 = vadd.f32 -1.0, %v2037_v24 }
  0xa5   :  { %2040 = vpow2.f32 %v262_v25  ;;  %v200_v31 = vadd.f32 %v2430_v40, %v199_v28  ;;  %1907 = vmatmul.msk.bf16.vlgmr.msra.gmra.mxu1 %vm455_vm4, %v406_v26 }
  0xa6   :  { %v377_v32 = vsel %vm227_vm5, %v195_v59, %v352_v27  ;;  %v152_v33 = vpop.f32.mrf.mxu0  ;;  %v333_v39 = vmul.f32 1.6732632, %v1868_v30 }
  0xa7   :  { %v402_v34 = vmul.f32 1.050701, %v377_v32  ;;  %v254_v35 = vmin.f32 %v200_v31, 0.0  ;;  %v153_v36 = vadd.f32 %v2430_v40, %v152_v33  ;;  %vm229_vm9 = vcmp.gt.f32.partialorder %v200_v31, 0.0 }
  0xa8   :  { %v358_v48 = vsel %vm208_vm6, %v2444_v63, %v333_v39 }
  0xa9   :  { %v2039_v37 = vpop.eup %2038  ;;  %v416_v38 = vpack.c.bf16 %v402_v34, %v401_v29  ;;  %v302_v41 = vmul.f32 1.442695, %v254_v35  ;;  %v235_v43 = vmin.f32 %v153_v36, 0.0  ;;  %v383_v55 = vmul.f32 1.050701, %v358_v48 }
  0xaa   :  { %v1888_v42 = vadd.f32 -1.0, %v2039_v37  ;;  %vm210_vm10 = vcmp.gt.f32.partialorder %v153_v36, 0.0 }
  0xab   :  { %v2041_v44 = vpop.eup %2040  ;;  %2042 = vpow2.f32 %v302_v41  ;;  %1917 = vmatmul.msk.bf16.vlgmr.msrb.gmra.mxu3 %vm455_vm4, %v416_v38  ;;  %v264_v46 = vmul.f32 1.442695, %v235_v43 }
  0xac   :  { %v1869_v45 = vadd.f32 -1.0, %v2041_v44  ;;  %v202_v47 = vpop.f32.mrf.mxu3  ;;  %v353_v50 = vmul.f32 1.6732632, %v1888_v42 }
  0xad   :  { %v203_v49 = vadd.f32 %v2430_v40, %v202_v47  ;;  %2044 = vpow2.f32 %v264_v46 }
  0xae   :  { %v334_v51 = vmul.f32 1.6732632, %v1869_v45  ;;  %v154_v52 = vpop.f32.mrf.mxu0  ;;  %v378_v61 = vsel %vm228_vm7, %v2449_v10, %v353_v50 }
  0xaf   :  { %v155_v53 = vadd.f32 %v2430_v40, %v154_v52  ;;  %v255_v54 = vmin.f32 %v203_v49, 0.0  ;;  %v403_v4 = vmul.f32 1.050701, %v378_v61  ;;  %vm230_vm11 = vcmp.gt.f32.partialorder %v203_v49, 0.0 }
  0xb0   :  { %v359_v56 = vsel %vm209_vm8, %v150_v15, %v334_v51 }
  0xb1   :  { %v2043_v57 = vpop.eup %2042  ;;  %v384_v58 = vmul.f32 1.050701, %v359_v56  ;;  %v236_v59 = vmin.f32 %v155_v53, 0.0  ;;  %v304_v60 = vmul.f32 1.442695, %v255_v54  ;;  %vm211_vm12 = vcmp.gt.f32.partialorder %v155_v53, 0.0 }
  0xb2   :  { %v1889_v62 = vadd.f32 -1.0, %v2043_v57 }
  0xb3   :  { %v266_v63 = vmul.f32 1.442695, %v236_v59  ;;  %v407_v0 = vpack.c.bf16 %v384_v58, %v383_v55  ;;  %2046 = vpow2.f32 %v304_v60  ;;  %v2045_v1 = vpop.eup %2044 }
  0xb4   :  { %v354_v2 = vmul.f32 1.6732632, %v1889_v62  ;;  %v204_v3 = vpop.f32.mrf.mxu3  ;;  %v1870_v6 = vadd.f32 -1.0, %v2045_v1 }
  0xb5   :  { %2048 = vpow2.f32 %v266_v63  ;;  %1908 = vmatmul.msk.bf16.gmra.mxu1 %vm455_vm4, %v407_v0 }
  0xb6   :  { %v379_v5 = vsel %vm229_vm9, %v200_v31, %v354_v2  ;;  %v157_v7 = vpop.f32.mrf.mxu0  ;;  %v335_v13 = vmul.f32 1.6732632, %v1870_v6 }
  0xb7   :  { %v404_v8 = vmul.f32 1.050701, %v379_v5  ;;  %v158_v9 = vadd.f32 %v2430_v40, %v157_v7 }
  0xb8   :  { %v360_v19 = vsel %vm210_vm10, %v153_v36, %v335_v13 }
  0xb9   :  { %v2047_v11 = vpop.eup %2046  ;;  %v237_v10 = vmin.f32 %v158_v9, 0.0  ;;  %v417_v12 = vpack.c.bf16 %v404_v8, %v403_v4  ;;  %v385_v25 = vmul.f32 1.050701, %v360_v19  ;;  %vm212_vm13 = vcmp.gt.f32.partialorder %v158_v9, 0.0 }
  0xba   :  { %v1890_v14 = vadd.f32 -1.0, %v2047_v11 }
  0xbb   :  { %v2049_v15 = vpop.eup %2048  ;;  %v268_v16 = vmul.f32 1.442695, %v237_v10  ;;  %1918 = vmatmul.msk.bf16.gmra.mxu3 %vm455_vm4, %v417_v12 }
  0xbc   :  { %v1871_v17 = vadd.f32 -1.0, %v2049_v15  ;;  %v355_v18 = vmul.f32 1.6732632, %v1890_v14 }
  0xbd   :  { %2050 = vpow2.f32 %v268_v16 }
  0xbe   :  { %v336_v20 = vmul.f32 1.6732632, %v1871_v17  ;;  %v159_v21 = vpop.f32.mrf.mxu0  ;;  %v380_v24 = vsel %vm230_vm11, %v203_v49, %v355_v18 }
  0xbf   :  { %v160_v22 = vadd.f32 %v2430_v40, %v159_v21  ;;  %v405_v31 = vmul.f32 1.050701, %v380_v24 }
  0xc0   :  { %v361_v23 = vsel %vm211_vm12, %v155_v53, %v336_v20 }
  0xc1   :  { %v386_v26 = vmul.f32 1.050701, %v361_v23  ;;  %v238_v27 = vmin.f32 %v160_v22, 0.0  ;;  %v418_v35 = vpack.c.bf16 %v405_v31, %v405_v31  ;;  %vm213_vm14 = vcmp.gt.f32.partialorder %v160_v22, 0.0 }
  0xc3   :  { %v2051_v28 = vpop.eup %2050  ;;  %v270_v29 = vmul.f32 1.442695, %v238_v27  ;;  %v408_v30 = vpack.c.bf16 %v386_v26, %v385_v25 }
  0xc4   :  { %v1872_v32 = vadd.f32 -1.0, %v2051_v28 }
  0xc5   :  { %2052 = vpow2.f32 %v270_v29  ;;  %1909 = vmatmul.msk.bf16.gmra.mxu1 %vm455_vm4, %v408_v30 }
  0xc6   :  { %v162_v33 = vpop.f32.mrf.mxu0  ;;  %v337_v37 = vmul.f32 1.6732632, %v1872_v32 }
  0xc7   :  { %v163_v34 = vadd.f32 %v2430_v40, %v162_v33 }
  0xc8   :  { %v362_v42 = vsel %vm212_vm13, %v158_v9, %v337_v37 }
  0xc9   :  { %v239_v36 = vmin.f32 %v163_v34, 0.0  ;;  %v387_v47 = vmul.f32 1.050701, %v362_v42  ;;  %vm214_vm15 = vcmp.gt.f32.partialorder %v163_v34, 0.0 }
  0xcb   :  { %v2053_v38 = vpop.eup %2052  ;;  %v272_v39 = vmul.f32 1.442695, %v239_v36  ;;  %1919 = vmatmul.msk.bf16.gmra.mxu3 %vm455_vm4, %v418_v35 }
  0xcc   :  { %v1873_v41 = vadd.f32 -1.0, %v2053_v38 }
  0xcd   :  { %2054 = vpow2.f32 %v272_v39 }
  0xce   :  { %v338_v43 = vmul.f32 1.6732632, %v1873_v41  ;;  %v164_v44 = vpop.f32.mrf.mxu0 }
  0xcf   :  { %v165_v45 = vadd.f32 %v2430_v40, %v164_v44 }
  0xd0   :  { %v363_v46 = vsel %vm213_vm14, %v160_v22, %v338_v43 }
  0xd1   :  { %v388_v48 = vmul.f32 1.050701, %v363_v46  ;;  %v240_v49 = vmin.f32 %v165_v45, 0.0  ;;  %vm215_vm0 = vcmp.gt.f32.partialorder %v165_v45, 0.0 }
  0xd3   :  { %v2055_v50 = vpop.eup %2054  ;;  %v274_v51 = vmul.f32 1.442695, %v240_v49  ;;  %v409_v52 = vpack.c.bf16 %v388_v48, %v387_v47 }
  0xd4   :  { %v1874_v53 = vadd.f32 -1.0, %v2055_v50 }
  0xd5   :  { %2056 = vpow2.f32 %v274_v51  ;;  %1910 = vmatmul.msk.bf16.gmra.mxu1 %vm455_vm4, %v409_v52 }
  0xd6   :  { %v167_v54 = vpop.f32.mrf.mxu0  ;;  %v339_v57 = vmul.f32 1.6732632, %v1874_v53 }
  0xd7   :  { %v168_v55 = vadd.f32 %v2430_v40, %v167_v54 }
  0xd8   :  { %v364_v61 = vsel %vm214_vm15, %v163_v34, %v339_v57 }
  0xd9   :  { %v241_v56 = vmin.f32 %v168_v55, 0.0  ;;  %v389_v2 = vmul.f32 1.050701, %v364_v61  ;;  %vm216_vm1 = vcmp.gt.f32.partialorder %v168_v55, 0.0 }
  0xdb   :  { %v2057_v58 = vpop.eup %2056  ;;  %v276_v59 = vmul.f32 1.442695, %v241_v56 }
  0xdc   :  { %v1875_v60 = vadd.f32 -1.0, %v2057_v58 }
  0xdd   :  { %2058 = vpow2.f32 %v276_v59 }
  0xde   :  { %v340_v62 = vmul.f32 1.6732632, %v1875_v60  ;;  %v169_v63 = vpop.f32.mrf.mxu0 }
  0xdf   :  { %v170_v0 = vadd.f32 %v2430_v40, %v169_v63  ;;  %v2008_v63 = vld [vmem:[%s3013_s5 + $0x18] sm:$0xff] }
  0xe0   :  { %v365_v1 = vsel %vm215_vm0, %v165_v45, %v340_v62  ;;  %860 = vmatpush.bf16.msra.mxu2 %v2008_v63  ;;  %2015 = vmatpush.bf16.msra.mxu3 %v2008_v63 }
  0xe1   :  { %v390_v3 = vmul.f32 1.050701, %v365_v1  ;;  %v242_v4 = vmin.f32 %v170_v0, 0.0  ;;  %vm217_vm2 = vcmp.gt.f32.partialorder %v170_v0, 0.0 }
  0xe3   :  { %v2059_v5 = vpop.eup %2058  ;;  %v278_v6 = vmul.f32 1.442695, %v242_v4  ;;  %v410_v7 = vpack.c.bf16 %v390_v3, %v389_v2  ;;  %v2007_v3 = vld [vmem:[%s3013_s5 + $0x10] sm:$0xff] }
  0xe4   :  { %v1876_v8 = vadd.f32 -1.0, %v2059_v5  ;;  %861 = vmatpush.bf16.msra.mxu2 %v2007_v3  ;;  %2016 = vmatpush.bf16.msra.mxu3 %v2007_v3 }
  0xe5   :  { %2060 = vpow2.f32 %v278_v6  ;;  %1911 = vmatmul.msk.bf16.gmra.mxu1 %vm455_vm4, %v410_v7 }
  0xe6   :  { %v172_v9 = vpop.f32.mrf.mxu0  ;;  %v341_v12 = vmul.f32 1.6732632, %v1876_v8  ;;  %v2006_v8 = vld [vmem:[%s3013_s5 + $0x8] sm:$0xff] }
  0xe7   :  { %v173_v11 = vadd.f32 %v2430_v40, %v172_v9 }
  0xe8   :  { %v366_v16 = vsel %vm216_vm1, %v168_v55, %v341_v12  ;;  %862 = vmatpush.bf16.msra.mxu2 %v2006_v8  ;;  %2017 = vmatpush.bf16.msra.mxu3 %v2006_v8 }
  0xe9   :  { %v243_v10 = vmin.f32 %v173_v11, 0.0  ;;  %v391_v21 = vmul.f32 1.050701, %v366_v16  ;;  %vm218_vm3 = vcmp.gt.f32.partialorder %v173_v11, 0.0 }
  0xeb   :  { %v2061_v13 = vpop.eup %2060  ;;  %v280_v14 = vmul.f32 1.442695, %v243_v10 }
  0xec   :  { %v1877_v15 = vadd.f32 -1.0, %v2061_v13  ;;  %v2005_v13 = vld [vmem:[%s3013_s5] sm:$0xff] }
  0xed   :  { %2062 = vpow2.f32 %v280_v14  ;;  %863 = vmatpush.bf16.msra.mxu2 %v2005_v13  ;;  %2018 = vmatpush.bf16.msra.mxu3 %v2005_v13 }
  0xee   :  { %v342_v17 = vmul.f32 1.6732632, %v1877_v15  ;;  %v174_v18 = vpop.f32.mrf.mxu0 }
  0xef   :  { %v175_v19 = vadd.f32 %v2430_v40, %v174_v18  ;;  %v2501_v18 = vld [vmem:[%s3012_s4] ss:$0 sm:$0xff] }
  0xf0   :  { %v367_v20 = vsel %vm217_vm2, %v170_v0, %v342_v17 }
  0xf1   :  { %v392_v22 = vmul.f32 1.050701, %v367_v20  ;;  %v244_v23 = vmin.f32 %v175_v19, 0.0  ;;  %vm219_vm5 = vcmp.gt.f32.partialorder %v175_v19, 0.0 }
  0xf3   :  { %v2063_v24 = vpop.eup %2062  ;;  %v282_v25 = vmul.f32 1.442695, %v244_v23  ;;  %v411_v26 = vpack.c.bf16 %v392_v22, %v391_v21 }
  0xf4   :  { %v1878_v27 = vadd.f32 -1.0, %v2063_v24 }
  0xf5   :  { %2064 = vpow2.f32 %v282_v25  ;;  %1912 = vmatmul.msk.bf16.gmra.mxu1 %vm455_vm4, %v411_v26 }
  0xf6   :  { %v177_v28 = vpop.f32.mrf.mxu0  ;;  %v343_v31 = vmul.f32 1.6732632, %v1878_v27 }
  0xf7   :  { %v178_v29 = vadd.f32 %v2430_v40, %v177_v28 }
  0xf8   :  { %v368_v35 = vsel %vm218_vm3, %v173_v11, %v343_v31 }
  0xf9   :  { %v245_v30 = vmin.f32 %v178_v29, 0.0  ;;  %v393_v41 = vmul.f32 1.050701, %v368_v35  ;;  %vm220_vm6 = vcmp.gt.f32.partialorder %v178_v29, 0.0 }
  0xfb   :  { %v2065_v32 = vpop.eup %2064  ;;  %v284_v33 = vmul.f32 1.442695, %v245_v30 }
  0xfc   :  { %v1879_v34 = vadd.f32 -1.0, %v2065_v32 }
  0xfd   :  { %2066 = vpow2.f32 %v284_v33 }
  0xfe   :  { %v344_v36 = vmul.f32 1.6732632, %v1879_v34  ;;  %v179_v37 = vpop.f32.mrf.mxu0 }
  0xff   :  { %v180_v38 = vadd.f32 %v2430_v40, %v179_v37 }
 0x100   :  { %v369_v39 = vsel %vm219_vm5, %v175_v19, %v344_v36 }
 0x101   :  { %v394_v42 = vmul.f32 1.050701, %v369_v39  ;;  %v246_v43 = vmin.f32 %v180_v38, 0.0  ;;  %vm221_vm7 = vcmp.gt.f32.partialorder %v180_v38, 0.0 }
 0x103   :  { %v2067_v44 = vpop.eup %2066  ;;  %v286_v45 = vmul.f32 1.442695, %v246_v43  ;;  %v412_v46 = vpack.c.bf16 %v394_v42, %v393_v41 }
 0x104   :  { %v1880_v47 = vadd.f32 -1.0, %v2067_v44 }
 0x105   :  { %2068 = vpow2.f32 %v286_v45  ;;  %1913 = vmatmul.msk.bf16.gmra.mxu1 %vm455_vm4, %v412_v46 }
 0x106   :  { %v182_v48 = vpop.f32.mrf.mxu0  ;;  %v345_v51 = vmul.f32 1.6732632, %v1880_v47 }
 0x107   :  { %v183_v49 = vadd.f32 %v2430_v40, %v182_v48 }
 0x108   :  { %v370_v55 = vsel %vm220_vm6, %v178_v29, %v345_v51 }
 0x109   :  { %v247_v50 = vmin.f32 %v183_v49, 0.0  ;;  %v395_v60 = vmul.f32 1.050701, %v370_v55  ;;  %vm222_vm8 = vcmp.gt.f32.partialorder %v183_v49, 0.0 }
 0x10b   :  { %v2069_v52 = vpop.eup %2068  ;;  %v288_v53 = vmul.f32 1.442695, %v247_v50 }
 0x10c   :  { %v1881_v54 = vadd.f32 -1.0, %v2069_v52 }
 0x10d   :  { %2070 = vpow2.f32 %v288_v53 }
 0x10e   :  { %v346_v56 = vmul.f32 1.6732632, %v1881_v54  ;;  %v184_v57 = vpop.f32.mrf.mxu0 }
 0x10f   :  { %v185_v58 = vadd.f32 %v2430_v40, %v184_v57 }
 0x110   :  { %v371_v59 = vsel %vm221_vm7, %v180_v38, %v346_v56 }
 0x111   :  { %v396_v61 = vmul.f32 1.050701, %v371_v59  ;;  %v248_v62 = vmin.f32 %v185_v58, 0.0  ;;  %vm223_vm9 = vcmp.gt.f32.partialorder %v185_v58, 0.0 }
 0x113   :  { %v2071_v0 = vpop.eup %2070  ;;  %v290_v1 = vmul.f32 1.442695, %v248_v62  ;;  %v413_v2 = vpack.c.bf16 %v396_v61, %v395_v60 }
 0x114   :  { %v1882_v4 = vadd.f32 -1.0, %v2071_v0 }
 0x115   :  { %2072 = vpow2.f32 %v290_v1  ;;  %1914 = vmatmul.msk.bf16.gmra.mxu1 %vm455_vm4, %v413_v2 }
 0x116   :  { %v187_v5 = vpop.f32.mrf.mxu0  ;;  %v347_v9 = vmul.f32 1.6732632, %v1882_v4 }
 0x117   :  { %v188_v6 = vadd.f32 %v2430_v40, %v187_v5 }
 0x118   :  { %v372_v14 = vsel %vm222_vm8, %v183_v49, %v347_v9 }
 0x119   :  { %v249_v7 = vmin.f32 %v188_v6, 0.0  ;;  %v397_v20 = vmul.f32 1.050701, %v372_v14  ;;  %vm224_vm10 = vcmp.gt.f32.partialorder %v188_v6, 0.0 }
 0x11b   :  { %v2073_v11 = vpop.eup %2072  ;;  %v292_v10 = vmul.f32 1.442695, %v249_v7 }
 0x11c   :  { %v1883_v12 = vadd.f32 -1.0, %v2073_v11 }
 0x11d   :  { %2074 = vpow2.f32 %v292_v10 }
 0x11e   :  { %v348_v15 = vmul.f32 1.6732632, %v1883_v12  ;;  %v189_v16 = vpop.f32.mrf.mxu0 }
 0x11f   :  { %v190_v17 = vadd.f32 %v2430_v40, %v189_v16 }
 0x120   :  { %v373_v19 = vsel %vm223_vm9, %v185_v58, %v348_v15 }
 0x121   :  { %v398_v21 = vmul.f32 1.050701, %v373_v19  ;;  %v250_v22 = vmin.f32 %v190_v17, 0.0  ;;  %vm225_vm11 = vcmp.gt.f32.partialorder %v190_v17, 0.0 }
 0x122   :  { %v504_v23 = vpop.f32.mrf.mxu1 }
 0x123   :  { %v2075_v24 = vpop.eup %2074  ;;  %v294_v25 = vmul.f32 1.442695, %v250_v22  ;;  %v505_v26 = vadd.f32 %v2501_v18, %v504_v23  ;;  %v414_v27 = vpack.c.bf16 %v398_v21, %v397_v20 }
 0x124   :  { %v1884_v28 = vadd.f32 -1.0, %v2075_v24 }
 0x125   :  { %2076 = vpow2.f32 %v294_v25  ;;  %v593_v40 = vmin.f32 %v505_v26, 0.0  ;;  %1915 = vmatmul.msk.bf16.gmra.mxu1 %vm455_vm4, %v414_v27  ;;  %vm568_vm12 = vcmp.gt.f32.partialorder %v505_v26, 0.0 }
 0x126   :  { %v349_v30 = vmul.f32 1.6732632, %v1884_v28 }
 0x127   :  { %v618_v29 = vmul.f32 1.442695, %v593_v40 }
 0x128   :  { %v374_v34 = vsel %vm224_vm10, %v188_v6, %v349_v30 }
 0x129   :  { %2078 = vpow2.f32 %v618_v29  ;;  %v399_v41 = vmul.f32 1.050701, %v374_v34 }
 0x12a   :  { %v506_v31 = vpop.f32.mrf.mxu1 }
 0x12b   :  { %v2077_v32 = vpop.eup %2076  ;;  %v507_v33 = vadd.f32 %v2501_v18, %v506_v31 }
 0x12c   :  { %v1885_v35 = vadd.f32 -1.0, %v2077_v32 }
 0x12d   :  { %v594_v36 = vmin.f32 %v507_v33, 0.0  ;;  %vm569_vm13 = vcmp.gt.f32.partialorder %v507_v33, 0.0 }
 0x12e   :  { %v350_v37 = vmul.f32 1.6732632, %v1885_v35  ;;  %v554_v38 = vpop.f32.mrf.mxu3 }
 0x12f   :  { %v2079_v39 = vpop.eup %2078  ;;  %v620_v42 = vmul.f32 1.442695, %v594_v36  ;;  %v555_v43 = vadd.f32 %v2501_v18, %v554_v38 }
 0x130   :  { %v375_v44 = vsel %vm225_vm11, %v190_v17, %v350_v37  ;;  %v1920_v47 = vadd.f32 -1.0, %v2079_v39 }
 0x131   :  { %v400_v45 = vmul.f32 1.050701, %v375_v44  ;;  %2080 = vpow2.f32 %v620_v42  ;;  %v613_v46 = vmin.f32 %v555_v43, 0.0  ;;  %vm588_vm14 = vcmp.gt.f32.partialorder %v555_v43, 0.0 }
 0x132   :  { %v509_v48 = vpop.f32.mrf.mxu1  ;;  %v693_v53 = vmul.f32 1.6732632, %v1920_v47 }
 0x133   :  { %v658_v49 = vmul.f32 1.442695, %v613_v46  ;;  %v510_v50 = vadd.f32 %v2501_v18, %v509_v48  ;;  %v415_v51 = vpack.c.bf16 %v400_v45, %v399_v41 }
 0x134   :  { %v718_v60 = vsel %vm568_vm12, %v505_v26, %v693_v53 }
 0x135   :  { %2082 = vpow2.f32 %v658_v49  ;;  %v595_v52 = vmin.f32 %v510_v50, 0.0  ;;  %1916 = vmatmul.msk.bf16.gmra.mxu1 %vm455_vm4, %v415_v51  ;;  %v743_v4 = vmul.f32 1.050701, %v718_v60  ;;  %vm570_vm0 = vcmp.gt.f32.partialorder %v510_v50, 0.0 }
 0x136   :  { %v556_v54 = vpop.f32.mrf.mxu3 }
 0x137   :  { %v2081_v55 = vpop.eup %2080  ;;  %v622_v56 = vmul.f32 1.442695, %v595_v52  ;;  %v557_v57 = vadd.f32 %v2501_v18, %v556_v54 }
 0x138   :  { %v1921_v58 = vadd.f32 -1.0, %v2081_v55 }
 0x139   :  { %2084 = vpow2.f32 %v622_v56  ;;  %v614_v59 = vmin.f32 %v557_v57, 0.0  ;;  %vm589_vm15 = vcmp.gt.f32.partialorder %v557_v57, 0.0 }
 0x13a   :  { %v694_v61 = vmul.f32 1.6732632, %v1921_v58  ;;  %v511_v62 = vpop.f32.mrf.mxu1 }
 0x13b   :  { %v2083_v63 = vpop.eup %2082  ;;  %v660_v0 = vmul.f32 1.442695, %v614_v59  ;;  %v512_v1 = vadd.f32 %v2501_v18, %v511_v62 }
 0x13c   :  { %v719_v2 = vsel %vm569_vm13, %v507_v33, %v694_v61  ;;  %v1940_v3 = vadd.f32 -1.0, %v2083_v63 }
 0x13d   :  { %v744_v5 = vmul.f32 1.050701, %v719_v2  ;;  %2086 = vpow2.f32 %v660_v0  ;;  %v596_v6 = vmin.f32 %v512_v1, 0.0  ;;  %vm571_vm1 = vcmp.gt.f32.partialorder %v512_v1, 0.0 }
 0x13e   :  { %v559_v7 = vpop.f32.mrf.mxu3  ;;  %v713_v12 = vmul.f32 1.6732632, %v1940_v3 }
 0x13f   :  { %v2085_v8 = vpop.eup %2084  ;;  %v624_v9 = vmul.f32 1.442695, %v596_v6  ;;  %v560_v11 = vadd.f32 %v2501_v18, %v559_v7  ;;  %v768_v10 = vpack.c.bf16 %v744_v5, %v743_v4 }
 0x140   :  { %v1922_v14 = vadd.f32 -1.0, %v2085_v8  ;;  %v738_v20 = vsel %vm588_vm14, %v555_v43, %v713_v12 }
 0x141   :  { %2088 = vpow2.f32 %v624_v9  ;;  %v615_v13 = vmin.f32 %v560_v11, 0.0  ;;  %1961 = vmatmul.msk.bf16.vlgmr.msra.gmra.mxu2 %vm455_vm4, %v768_v10  ;;  %v763_v27 = vmul.f32 1.050701, %v738_v20  ;;  %vm590_vm2 = vcmp.gt.f32.partialorder %v560_v11, 0.0 }
 0x142   :  { %v514_v15 = vpop.f32.mrf.mxu1  ;;  %v695_v23 = vmul.f32 1.6732632, %v1922_v14 }
 0x143   :  { %v2087_v16 = vpop.eup %2086  ;;  %v662_v17 = vmul.f32 1.442695, %v615_v13  ;;  %v2514_v19 = vadd.f32 %v2501_v18, %v514_v15 }
 0x144   :  { %v1941_v21 = vadd.f32 -1.0, %v2087_v16  ;;  %v720_v33 = vsel %vm570_vm0, %v510_v50, %v695_v23 }
 0x145   :  { %2090 = vpow2.f32 %v662_v17  ;;  %v597_v22 = vmin.f32 %v2514_v19, 0.0  ;;  %v745_v43 = vmul.f32 1.050701, %v720_v33  ;;  %vm572_vm5 = vcmp.gt.f32.partialorder %v2514_v19, 0.0 }
 0x146   :  { %v714_v24 = vmul.f32 1.6732632, %v1941_v21  ;;  %v561_v25 = vpop.f32.mrf.mxu3 }
 0x147   :  { %v2089_v26 = vpop.eup %2088  ;;  %v626_v28 = vmul.f32 1.442695, %v597_v22  ;;  %v562_v40 = vadd.f32 %v2501_v18, %v561_v25 }
 0x148   :  { %v739_v29 = vsel %vm589_vm15, %v557_v57, %v714_v24  ;;  %v1923_v30 = vadd.f32 -1.0, %v2089_v26 }
 0x149   :  { %v764_v31 = vmul.f32 1.050701, %v739_v29  ;;  %2092 = vpow2.f32 %v626_v28  ;;  %v616_v32 = vmin.f32 %v562_v40, 0.0  ;;  %vm591_vm3 = vcmp.gt.f32.partialorder %v562_v40, 0.0 }
 0x14a   :  { %v696_v34 = vmul.f32 1.6732632, %v1923_v30  ;;  %v516_v35 = vpop.f32.mrf.mxu1 }
 0x14b   :  { %v2091_v36 = vpop.eup %2090  ;;  %v778_v37 = vpack.c.bf16 %v764_v31, %v763_v27  ;;  %v664_v38 = vmul.f32 1.442695, %v616_v32  ;;  %v517_v39 = vadd.f32 %v2501_v18, %v516_v35 }
 0x14c   :  { %v721_v41 = vsel %vm571_vm1, %v512_v1, %v696_v34  ;;  %v1942_v42 = vadd.f32 -1.0, %v2091_v36 }
 0x14d   :  { %v746_v44 = vmul.f32 1.050701, %v721_v41  ;;  %2094 = vpow2.f32 %v664_v38  ;;  %v598_v45 = vmin.f32 %v517_v39, 0.0  ;;  %1971 = vmatmul.msk.bf16.vlgmr.msra.gmra.mxu3 %vm455_vm4, %v778_v37  ;;  %vm573_vm6 = vcmp.gt.f32.partialorder %v517_v39, 0.0 }
 0x14e   :  { %v564_v46 = vpop.f32.mrf.mxu3  ;;  %v715_v51 = vmul.f32 1.6732632, %v1942_v42 }
 0x14f   :  { %v2093_v47 = vpop.eup %2092  ;;  %v628_v48 = vmul.f32 1.442695, %v598_v45  ;;  %v769_v49 = vpack.c.bf16 %v746_v44, %v745_v43  ;;  %v565_v50 = vadd.f32 %v2501_v18, %v564_v46 }
 0x150   :  { %v1924_v53 = vadd.f32 -1.0, %v2093_v47  ;;  %v740_v58 = vsel %vm590_vm2, %v560_v11, %v715_v51 }
 0x151   :  { %2096 = vpow2.f32 %v628_v48  ;;  %1962 = vmatmul.msk.bf16.gmra.mxu2 %vm455_vm4, %v769_v49  ;;  %v617_v52 = vmin.f32 %v565_v50, 0.0  ;;  %v765_v1 = vmul.f32 1.050701, %v740_v58  ;;  %vm592_vm7 = vcmp.gt.f32.partialorder %v565_v50, 0.0 }
 0x152   :  { %v519_v54 = vpop.f32.mrf.mxu1  ;;  %v697_v61 = vmul.f32 1.6732632, %v1924_v53 }
 0x153   :  { %v2095_v55 = vpop.eup %2094  ;;  %v520_v56 = vadd.f32 %v2501_v18, %v519_v54  ;;  %v666_v57 = vmul.f32 1.442695, %v617_v52 }
 0x154   :  { %v1943_v59 = vadd.f32 -1.0, %v2095_v55  ;;  %v722_v6 = vsel %vm572_vm5, %v2514_v19, %v697_v61 }
 0x155   :  { %v599_v60 = vmin.f32 %v520_v56, 0.0  ;;  %2098 = vpow2.f32 %v666_v57  ;;  %v747_v14 = vmul.f32 1.050701, %v722_v6  ;;  %vm574_vm8 = vcmp.gt.f32.partialorder %v520_v56, 0.0 }
 0x156   :  { %v716_v62 = vmul.f32 1.6732632, %v1943_v59  ;;  %v566_v63 = vpop.f32.mrf.mxu3 }
 0x157   :  { %v2097_v0 = vpop.eup %2096  ;;  %v630_v2 = vmul.f32 1.442695, %v599_v60 }
 0x158   :  { %v741_v3 = vsel %vm591_vm3, %v562_v40, %v716_v62  ;;  %v1925_v4 = vadd.f32 -1.0, %v2097_v0 }
 0x159   :  { %v766_v5 = vmul.f32 1.050701, %v741_v3  ;;  %2100 = vpow2.f32 %v630_v2 }
 0x15a   :  { %v698_v7 = vmul.f32 1.6732632, %v1925_v4  ;;  %v521_v8 = vpop.f32.mrf.mxu1 }
 0x15b   :  { %v2099_v9 = vpop.eup %2098  ;;  %v522_v11 = vadd.f32 %v2501_v18, %v521_v8  ;;  %v779_v10 = vpack.c.bf16 %v766_v5, %v765_v1 }
 0x15c   :  { %v723_v12 = vsel %vm573_vm6, %v517_v39, %v698_v7  ;;  %v1944_v13 = vadd.f32 -1.0, %v2099_v9 }
 0x15d   :  { %v748_v15 = vmul.f32 1.050701, %v723_v12  ;;  %v600_v16 = vmin.f32 %v522_v11, 0.0  ;;  %1972 = vmatmul.msk.bf16.gmra.mxu3 %vm455_vm4, %v779_v10  ;;  %vm575_vm9 = vcmp.gt.f32.partialorder %v522_v11, 0.0 }
 0x15e   :  { %v717_v17 = vmul.f32 1.6732632, %v1944_v13 }
 0x15f   :  { %v2101_v20 = vpop.eup %2100  ;;  %v632_v21 = vmul.f32 1.442695, %v600_v16  ;;  %v770_v22 = vpack.c.bf16 %v748_v15, %v747_v14 }
 0x160   :  { %v1926_v19 = vadd.f32 -1.0, %v2101_v20  ;;  %v742_v24 = vsel %vm592_vm7, %v565_v50, %v717_v17 }
 0x161   :  { %2102 = vpow2.f32 %v632_v21  ;;  %1963 = vmatmul.msk.bf16.gmra.mxu2 %vm455_vm4, %v770_v22  ;;  %v767_v27 = vmul.f32 1.050701, %v742_v24 }
 0x162   :  { %v524_v23 = vpop.f32.mrf.mxu1  ;;  %v699_v28 = vmul.f32 1.6732632, %v1926_v19 }
 0x163   :  { %v525_v25 = vadd.f32 %v2501_v18, %v524_v23  ;;  %v780_v31 = vpack.c.bf16 %v767_v27, %v767_v27 }
 0x164   :  { %v724_v32 = vsel %vm574_vm8, %v520_v56, %v699_v28 }
 0x165   :  { %v601_v26 = vmin.f32 %v525_v25, 0.0  ;;  %v749_v37 = vmul.f32 1.050701, %v724_v32  ;;  %vm576_vm10 = vcmp.gt.f32.partialorder %v525_v25, 0.0 }
 0x167   :  { %v2103_v40 = vpop.eup %2102  ;;  %v634_v29 = vmul.f32 1.442695, %v601_v26 }
 0x168   :  { %v1927_v30 = vadd.f32 -1.0, %v2103_v40 }
 0x169   :  { %2104 = vpow2.f32 %v634_v29 }
 0x16a   :  { %v700_v33 = vmul.f32 1.6732632, %v1927_v30  ;;  %v526_v34 = vpop.f32.mrf.mxu1 }
 0x16b   :  { %v527_v35 = vadd.f32 %v2501_v18, %v526_v34 }
 0x16c   :  { %v725_v36 = vsel %vm575_vm9, %v522_v11, %v700_v33 }
 0x16d   :  { %v750_v38 = vmul.f32 1.050701, %v725_v36  ;;  %v602_v39 = vmin.f32 %v527_v35, 0.0  ;;  %1973 = vmatmul.msk.bf16.gmra.mxu3 %vm455_vm4, %v780_v31  ;;  %vm577_vm11 = vcmp.gt.f32.partialorder %v527_v35, 0.0 }
 0x16f   :  { %v2105_v41 = vpop.eup %2104  ;;  %v636_v42 = vmul.f32 1.442695, %v602_v39  ;;  %v771_v43 = vpack.c.bf16 %v750_v38, %v749_v37 }
 0x170   :  { %v1928_v44 = vadd.f32 -1.0, %v2105_v41 }
 0x171   :  { %2106 = vpow2.f32 %v636_v42  ;;  %1964 = vmatmul.msk.bf16.gmra.mxu2 %vm455_vm4, %v771_v43 }
 0x172   :  { %v529_v45 = vpop.f32.mrf.mxu1  ;;  %v701_v48 = vmul.f32 1.6732632, %v1928_v44 }
 0x173   :  { %v530_v46 = vadd.f32 %v2501_v18, %v529_v45 }
 0x174   :  { %v726_v52 = vsel %vm576_vm10, %v525_v25, %v701_v48 }
 0x175   :  { %v603_v47 = vmin.f32 %v530_v46, 0.0  ;;  %v751_v57 = vmul.f32 1.050701, %v726_v52  ;;  %vm578_vm12 = vcmp.gt.f32.partialorder %v530_v46, 0.0 }
 0x177   :  { %v2107_v49 = vpop.eup %2106  ;;  %v638_v50 = vmul.f32 1.442695, %v603_v47 }
 0x178   :  { %v1929_v51 = vadd.f32 -1.0, %v2107_v49 }
 0x179   :  { %2108 = vpow2.f32 %v638_v50 }
 0x17a   :  { %v702_v53 = vmul.f32 1.6732632, %v1929_v51  ;;  %v531_v54 = vpop.f32.mrf.mxu1 }
 0x17b   :  { %v532_v55 = vadd.f32 %v2501_v18, %v531_v54 }
 0x17c   :  { %v727_v56 = vsel %vm577_vm11, %v527_v35, %v702_v53 }
 0x17d   :  { %v752_v58 = vmul.f32 1.050701, %v727_v56  ;;  %v604_v59 = vmin.f32 %v532_v55, 0.0  ;;  %vm579_vm13 = vcmp.gt.f32.partialorder %v532_v55, 0.0 }
 0x17f   :  { %v2109_v60 = vpop.eup %2108  ;;  %v640_v61 = vmul.f32 1.442695, %v604_v59  ;;  %v772_v62 = vpack.c.bf16 %v752_v58, %v751_v57 }
 0x180   :  { %v1930_v63 = vadd.f32 -1.0, %v2109_v60 }
 0x181   :  { %2110 = vpow2.f32 %v640_v61  ;;  %1965 = vmatmul.msk.bf16.gmra.mxu2 %vm455_vm4, %v772_v62 }
 0x182   :  { %v534_v0 = vpop.f32.mrf.mxu1  ;;  %v703_v3 = vmul.f32 1.6732632, %v1930_v63 }
 0x183   :  { %v535_v1 = vadd.f32 %v2501_v18, %v534_v0 }
 0x184   :  { %v728_v7 = vsel %vm578_vm12, %v530_v46, %v703_v3 }
 0x185   :  { %v605_v2 = vmin.f32 %v535_v1, 0.0  ;;  %v753_v12 = vmul.f32 1.050701, %v728_v7  ;;  %vm580_vm14 = vcmp.gt.f32.partialorder %v535_v1, 0.0 }
 0x187   :  { %v2111_v4 = vpop.eup %2110  ;;  %v642_v5 = vmul.f32 1.442695, %v605_v2 }
 0x188   :  { %v1931_v6 = vadd.f32 -1.0, %v2111_v4 }
 0x189   :  { %2112 = vpow2.f32 %v642_v5 }
 0x18a   :  { %v704_v8 = vmul.f32 1.6732632, %v1931_v6  ;;  %v536_v9 = vpop.f32.mrf.mxu1 }
 0x18b   :  { %v537_v11 = vadd.f32 %v2501_v18, %v536_v9 }
 0x18c   :  { %v729_v10 = vsel %vm579_vm13, %v532_v55, %v704_v8 }
 0x18d   :  { %v754_v13 = vmul.f32 1.050701, %v729_v10  ;;  %v606_v14 = vmin.f32 %v537_v11, 0.0  ;;  %vm581_vm15 = vcmp.gt.f32.partialorder %v537_v11, 0.0 }
 0x18f   :  { %v2113_v15 = vpop.eup %2112  ;;  %v644_v16 = vmul.f32 1.442695, %v606_v14  ;;  %v773_v17 = vpack.c.bf16 %v754_v13, %v753_v12  ;;  %v2550_v12 = vld [vmem:[%s3014_s6] ss:$0 sm:$0xff] }
 0x190   :  { %v1932_v20 = vadd.f32 -1.0, %v2113_v15 }
 0x191   :  { %2114 = vpow2.f32 %v644_v16  ;;  %1966 = vmatmul.msk.bf16.gmra.mxu2 %vm455_vm4, %v773_v17 }
 0x192   :  { %v539_v21 = vpop.f32.mrf.mxu1  ;;  %v705_v23 = vmul.f32 1.6732632, %v1932_v20 }
 0x193   :  { %v540_v22 = vadd.f32 %v2501_v18, %v539_v21 }
 0x194   :  { %v730_v27 = vsel %vm580_vm14, %v535_v1, %v705_v23 }
 0x195   :  { %v607_v19 = vmin.f32 %v540_v22, 0.0  ;;  %v755_v31 = vmul.f32 1.050701, %v730_v27  ;;  %vm582_vm0 = vcmp.gt.f32.partialorder %v540_v22, 0.0 }
 0x197   :  { %v2115_v24 = vpop.eup %2114  ;;  %v646_v25 = vmul.f32 1.442695, %v607_v19 }
 0x198   :  { %v1933_v26 = vadd.f32 -1.0, %v2115_v24 }
 0x199   :  { %2116 = vpow2.f32 %v646_v25 }
 0x19a   :  { %v706_v28 = vmul.f32 1.6732632, %v1933_v26  ;;  %v541_v40 = vpop.f32.mrf.mxu1 }
 0x19b   :  { %v542_v29 = vadd.f32 %v2501_v18, %v541_v40 }
 0x19c   :  { %v731_v30 = vsel %vm581_vm15, %v537_v11, %v706_v28 }
 0x19d   :  { %v756_v32 = vmul.f32 1.050701, %v731_v30  ;;  %v608_v33 = vmin.f32 %v542_v29, 0.0  ;;  %vm583_vm1 = vcmp.gt.f32.partialorder %v542_v29, 0.0 }
 0x19f   :  { %v2117_v34 = vpop.eup %2116  ;;  %v648_v35 = vmul.f32 1.442695, %v608_v33  ;;  %v774_v36 = vpack.c.bf16 %v756_v32, %v755_v31 }
 0x1a0   :  { %v1934_v37 = vadd.f32 -1.0, %v2117_v34 }
 0x1a1   :  { %2118 = vpow2.f32 %v648_v35  ;;  %1967 = vmatmul.msk.bf16.gmra.mxu2 %vm455_vm4, %v774_v36 }
 0x1a2   :  { %v544_v38 = vpop.f32.mrf.mxu1  ;;  %v707_v42 = vmul.f32 1.6732632, %v1934_v37 }
 0x1a3   :  { %v545_v39 = vadd.f32 %v2501_v18, %v544_v38 }
 0x1a4   :  { %v732_v46 = vsel %vm582_vm0, %v540_v22, %v707_v42 }
 0x1a5   :  { %v609_v41 = vmin.f32 %v545_v39, 0.0  ;;  %v757_v51 = vmul.f32 1.050701, %v732_v46  ;;  %vm584_vm2 = vcmp.gt.f32.partialorder %v545_v39, 0.0 }
 0x1a7   :  { %v2119_v43 = vpop.eup %2118  ;;  %v650_v44 = vmul.f32 1.442695, %v609_v41 }
 0x1a8   :  { %v1935_v45 = vadd.f32 -1.0, %v2119_v43 }
 0x1a9   :  { %2120 = vpow2.f32 %v650_v44 }
 0x1aa   :  { %v708_v47 = vmul.f32 1.6732632, %v1935_v45  ;;  %v546_v48 = vpop.f32.mrf.mxu1 }
 0x1ab   :  { %v547_v49 = vadd.f32 %v2501_v18, %v546_v48 }
 0x1ac   :  { %v733_v50 = vsel %vm583_vm1, %v542_v29, %v708_v47 }
 0x1ad   :  { %v758_v52 = vmul.f32 1.050701, %v733_v50  ;;  %v610_v53 = vmin.f32 %v547_v49, 0.0  ;;  %vm585_vm3 = vcmp.gt.f32.partialorder %v547_v49, 0.0 }
 0x1af   :  { %v2121_v54 = vpop.eup %2120  ;;  %v652_v55 = vmul.f32 1.442695, %v610_v53  ;;  %v775_v56 = vpack.c.bf16 %v758_v52, %v757_v51 }
 0x1b0   :  { %v1936_v57 = vadd.f32 -1.0, %v2121_v54 }
 0x1b1   :  { %2122 = vpow2.f32 %v652_v55  ;;  %1968 = vmatmul.msk.bf16.gmra.mxu2 %vm455_vm4, %v775_v56 }
 0x1b2   :  { %v549_v58 = vpop.f32.mrf.mxu1  ;;  %v709_v61 = vmul.f32 1.6732632, %v1936_v57 }
 0x1b3   :  { %v550_v59 = vadd.f32 %v2501_v18, %v549_v58 }
 0x1b4   :  { %v734_v1 = vsel %vm584_vm2, %v545_v39, %v709_v61  ;;  %v2560_v39 = vld [vmem:[%s3015_s7] ss:$0 sm:$0xff] }
 0x1b5   :  { %v611_v60 = vmin.f32 %v550_v59, 0.0  ;;  %v759_v6 = vmul.f32 1.050701, %v734_v1  ;;  %vm586_vm5 = vcmp.gt.f32.partialorder %v550_v59, 0.0 }
 0x1b7   :  { %v2123_v62 = vpop.eup %2122  ;;  %v654_v63 = vmul.f32 1.442695, %v611_v60 }
 0x1b8   :  { %v1937_v0 = vadd.f32 -1.0, %v2123_v62 }
 0x1b9   :  { %2124 = vpow2.f32 %v654_v63 }
 0x1ba   :  { %v710_v2 = vmul.f32 1.6732632, %v1937_v0  ;;  %v551_v3 = vpop.f32.mrf.mxu1 }
 0x1bb   :  { %v552_v4 = vadd.f32 %v2501_v18, %v551_v3 }
 0x1bc   :  { %v735_v5 = vsel %vm585_vm3, %v547_v49, %v710_v2 }
 0x1bd   :  { %v760_v7 = vmul.f32 1.050701, %v735_v5  ;;  %v612_v8 = vmin.f32 %v552_v4, 0.0  ;;  %vm587_vm6 = vcmp.gt.f32.partialorder %v552_v4, 0.0 }
 0x1bf   :  { %v2125_v9 = vpop.eup %2124  ;;  %v656_v11 = vmul.f32 1.442695, %v612_v8  ;;  %v776_v10 = vpack.c.bf16 %v760_v7, %v759_v6 }
 0x1c0   :  { %v1938_v13 = vadd.f32 -1.0, %v2125_v9 }
 0x1c1   :  { %2126 = vpow2.f32 %v656_v11  ;;  %1969 = vmatmul.msk.bf16.gmra.mxu2 %vm455_vm4, %v776_v10 }
 0x1c2   :  { %v711_v18 = vmul.f32 1.6732632, %v1938_v13 }
 0x1c4   :  { %v865_v14 = vpop.f32.mrf.mxu2  ;;  %v736_v22 = vsel %vm586_vm5, %v550_v59, %v711_v18 }
 0x1c5   :  { %v866_v15 = vadd.f32 %v2550_v12, %v865_v14  ;;  %v761_v25 = vmul.f32 1.050701, %v736_v22 }
 0x1c7   :  { %v2127_v16 = vpop.eup %2126  ;;  %v954_v17 = vmin.f32 %v866_v15, 0.0  ;;  %vm929_vm7 = vcmp.gt.f32.partialorder %v866_v15, 0.0 }
 0x1c8   :  { %v1939_v20 = vadd.f32 -1.0, %v2127_v16 }
 0x1c9   :  { %v979_v21 = vmul.f32 1.442695, %v954_v17 }
 0x1ca   :  { %v712_v19 = vmul.f32 1.6732632, %v1939_v20 }
 0x1cb   :  { %2128 = vpow2.f32 %v979_v21 }
 0x1cc   :  { %v737_v23 = vsel %vm587_vm6, %v552_v4, %v712_v19  ;;  %v867_v24 = vpop.f32.mrf.mxu2 }
 0x1cd   :  { %v762_v26 = vmul.f32 1.050701, %v737_v23  ;;  %v868_v27 = vadd.f32 %v2550_v12, %v867_v24 }
 0x1cf   :  { %v955_v28 = vmin.f32 %v868_v27, 0.0  ;;  %v777_v40 = vpack.c.bf16 %v762_v26, %v761_v25  ;;  %vm930_vm8 = vcmp.gt.f32.partialorder %v868_v27, 0.0 }
 0x1d0   :  { %v915_v29 = vpop.f32.mrf.mxu3 }
 0x1d1   :  { %v2129_v30 = vpop.eup %2128  ;;  %v981_v31 = vmul.f32 1.442695, %v955_v28  ;;  %v916_v32 = vadd.f32 %v2550_v12, %v915_v29  ;;  %1970 = vmatmul.msk.bf16.gmra.mxu2 %vm455_vm4, %v777_v40 }
 0x1d2   :  { %v1974_v33 = vadd.f32 -1.0, %v2129_v30 }
 0x1d3   :  { %2130 = vpow2.f32 %v981_v31  ;;  %v974_v34 = vmin.f32 %v916_v32, 0.0  ;;  %vm949_vm9 = vcmp.gt.f32.partialorder %v916_v32, 0.0 }
 0x1d4   :  { %v1054_v35 = vmul.f32 1.6732632, %v1974_v33  ;;  %v870_v36 = vpop.f32.mrf.mxu2 }
 0x1d5   :  { %v1019_v37 = vmul.f32 1.442695, %v974_v34  ;;  %v871_v38 = vadd.f32 %v2550_v12, %v870_v36 }
 0x1d6   :  { %v1079_v41 = vsel %vm929_vm7, %v866_v15, %v1054_v35 }
 0x1d7   :  { %2132 = vpow2.f32 %v1019_v37  ;;  %v956_v42 = vmin.f32 %v871_v38, 0.0  ;;  %v1104_v43 = vmul.f32 1.050701, %v1079_v41  ;;  %vm931_vm10 = vcmp.gt.f32.partialorder %v871_v38, 0.0 }
 0x1d8   :  { %v917_v44 = vpop.f32.mrf.mxu3 }
 0x1d9   :  { %v2131_v45 = vpop.eup %2130  ;;  %v983_v46 = vmul.f32 1.442695, %v956_v42  ;;  %v918_v47 = vadd.f32 %v2550_v12, %v917_v44  ;;  %v1133_v48 = vmul.f32 %v2560_v39, %v1104_v43 }
 0x1da   :  { %v1975_v49 = vadd.f32 -1.0, %v2131_v45 }
 0x1db   :  { %2134 = vpow2.f32 %v983_v46  ;;  %v975_v50 = vmin.f32 %v918_v47, 0.0  ;;  %v1158_v51 = vsel %vm455_vm4, %v1133_v48, 0.0  ;;  %vm950_vm11 = vcmp.gt.f32.partialorder %v918_v47, 0.0 }
 0x1dc   :  { %v1055_v52 = vmul.f32 1.6732632, %v1975_v49  ;;  %v872_v53 = vpop.f32.mrf.mxu2  ;;  %1159 = vadd.xlane.f32.xlu0 %v1158_v51 }
 0x1dd   :  { %v2133_v54 = vpop.eup %2132  ;;  %v1021_v55 = vmul.f32 1.442695, %v975_v50  ;;  %v873_v56 = vadd.f32 %v2550_v12, %v872_v53 }
 0x1de   :  { %v1994_v57 = vadd.f32 -1.0, %v2133_v54  ;;  %v1080_v58 = vsel %vm930_vm8, %v868_v27, %v1055_v52 }
 0x1df   :  { %2136 = vpow2.f32 %v1021_v55  ;;  %v957_v59 = vmin.f32 %v873_v56, 0.0  ;;  %v1105_v60 = vmul.f32 1.050701, %v1080_v58  ;;  %vm932_vm12 = vcmp.gt.f32.partialorder %v873_v56, 0.0 }
 0x1e0   :  { %v1074_v61 = vmul.f32 1.6732632, %v1994_v57  ;;  %v920_v62 = vpop.f32.mrf.mxu3 }
 0x1e1   :  { %v2135_v63 = vpop.eup %2134  ;;  %v985_v0 = vmul.f32 1.442695, %v957_v59  ;;  %v921_v1 = vadd.f32 %v2550_v12, %v920_v62  ;;  %v1134_v2 = vmul.f32 %v2560_v39, %v1105_v60 }
 0x1e2   :  { %v1976_v3 = vadd.f32 -1.0, %v2135_v63  ;;  %v1099_v4 = vsel %vm949_vm9, %v916_v32, %v1074_v61 }
 0x1e3   :  { %2138 = vpow2.f32 %v985_v0  ;;  %v976_v5 = vmin.f32 %v921_v1, 0.0  ;;  %v1161_v6 = vsel %vm455_vm4, %v1134_v2, 0.0  ;;  %v1124_v9 = vmul.f32 1.050701, %v1099_v4 }
 0x1e4   :  { %v1056_v7 = vmul.f32 1.6732632, %v1976_v3  ;;  %v875_v8 = vpop.f32.mrf.mxu2  ;;  %1162 = vadd.xlane.f32.xlu0 %v1161_v6  ;;  %vm951_vm13 = vcmp.gt.f32.partialorder %v921_v1, 0.0 }
 0x1e5   :  { %v2137_v11 = vpop.eup %2136  ;;  %v1023_v10 = vmul.f32 1.442695, %v976_v5  ;;  %v876_v13 = vadd.f32 %v2550_v12, %v875_v8  ;;  %v1153_v15 = vmul.f32 %v2560_v39, %v1124_v9 }
 0x1e6   :  { %v1995_v14 = vadd.f32 -1.0, %v2137_v11  ;;  %v1081_v18 = vsel %vm931_vm10, %v871_v38, %v1056_v7 }
 0x1e7   :  { %2140 = vpow2.f32 %v1023_v10  ;;  %v958_v16 = vmin.f32 %v876_v13, 0.0  ;;  %v1106_v17 = vmul.f32 1.050701, %v1081_v18  ;;  %v1218_v22 = vsel %vm455_vm4, %v1153_v15, 0.0 }
 0x1e8   :  { %v1075_v20 = vmul.f32 1.6732632, %v1995_v14  ;;  %v922_v21 = vpop.f32.mrf.mxu3  ;;  %1219 = vadd.xlane.f32.xlu2 %v1218_v22  ;;  %vm933_vm14 = vcmp.gt.f32.partialorder %v876_v13, 0.0 }
 0x1e9   :  { %v2139_v19 = vpop.eup %2138  ;;  %v987_v23 = vmul.f32 1.442695, %v958_v16  ;;  %v923_v24 = vadd.f32 %v2550_v12, %v922_v21  ;;  %v1135_v25 = vmul.f32 %v2560_v39, %v1106_v17 }
 0x1ea   :  { %v1977_v26 = vadd.f32 -1.0, %v2139_v19  ;;  %v1100_v27 = vsel %vm950_vm11, %v918_v47, %v1075_v20 }
 0x1eb   :  { %2142 = vpow2.f32 %v987_v23  ;;  %v977_v28 = vmin.f32 %v923_v24, 0.0  ;;  %v1164_v40 = vsel %vm455_vm4, %v1135_v25, 0.0  ;;  %v1125_v31 = vmul.f32 1.050701, %v1100_v27 }
 0x1ec   :  { %v1057_v29 = vmul.f32 1.6732632, %v1977_v26  ;;  %v877_v30 = vpop.f32.mrf.mxu2  ;;  %1165 = vadd.xlane.f32.xlu1 %v1164_v40  ;;  %vm952_vm15 = vcmp.gt.f32.partialorder %v923_v24, 0.0 }
 0x1ed   :  { %v2141_v32 = vpop.eup %2140  ;;  %v1025_v33 = vmul.f32 1.442695, %v977_v28  ;;  %v878_v34 = vadd.f32 %v2550_v12, %v877_v30  ;;  %v1154_v36 = vmul.f32 %v2560_v39, %v1125_v31 }
 0x1ee   :  { %v1996_v35 = vadd.f32 -1.0, %v2141_v32  ;;  %v1082_v37 = vsel %vm932_vm12, %v873_v56, %v1057_v29 }
 0x1ef   :  { %2144 = vpow2.f32 %v1025_v33  ;;  %v959_v38 = vmin.f32 %v878_v34, 0.0  ;;  %v1107_v41 = vmul.f32 1.050701, %v1082_v37  ;;  %v1221_v44 = vsel %vm455_vm4, %v1154_v36, 0.0 }
 0x1f0   :  { %v1076_v42 = vmul.f32 1.6732632, %v1996_v35  ;;  %v925_v43 = vpop.f32.mrf.mxu3  ;;  %1222 = vadd.xlane.f32.xlu0 %v1221_v44  ;;  %vm934_vm0 = vcmp.gt.f32.partialorder %v878_v34, 0.0 }
 0x1f1   :  { %v2143_v45 = vpop.eup %2142  ;;  %v989_v46 = vmul.f32 1.442695, %v959_v38  ;;  %v926_v47 = vadd.f32 %v2550_v12, %v925_v43  ;;  %v1136_v48 = vmul.f32 %v2560_v39, %v1107_v41 }
 0x1f2   :  { %v1978_v49 = vadd.f32 -1.0, %v2143_v45  ;;  %v1101_v50 = vsel %vm951_vm13, %v921_v1, %v1076_v42 }
 0x1f3   :  { %2146 = vpow2.f32 %v989_v46  ;;  %v978_v51 = vmin.f32 %v926_v47, 0.0  ;;  %v1167_v52 = vsel %vm455_vm4, %v1136_v48, 0.0  ;;  %v1126_v55 = vmul.f32 1.050701, %v1101_v50 }
 0x1f4   :  { %v1058_v53 = vmul.f32 1.6732632, %v1978_v49  ;;  %v880_v54 = vpop.f32.mrf.mxu2  ;;  %1168 = vadd.xlane.f32.xlu1 %v1167_v52  ;;  %vm953_vm1 = vcmp.gt.f32.partialorder %v926_v47, 0.0 }
 0x1f5   :  { %v2145_v56 = vpop.eup %2144  ;;  %v1027_v57 = vmul.f32 1.442695, %v978_v51  ;;  %v881_v58 = vadd.f32 %v2550_v12, %v880_v54  ;;  %v1155_v61 = vmul.f32 %v2560_v39, %v1126_v55 }
 0x1f6   :  { %v1997_v59 = vadd.f32 -1.0, %v2145_v56  ;;  %v1083_v60 = vsel %vm933_vm14, %v876_v13, %v1058_v53 }
 0x1f7   :  { %2148 = vpow2.f32 %v1027_v57  ;;  %v960_v62 = vmin.f32 %v881_v58, 0.0  ;;  %v1108_v63 = vmul.f32 1.050701, %v1083_v60  ;;  %v1224_v5 = vsel %vm455_vm4, %v1155_v61, 0.0 }
 0x1f8   :  { %v1077_v0 = vmul.f32 1.6732632, %v1997_v59  ;;  %v927_v1 = vpop.f32.mrf.mxu3  ;;  %vm935_vm2 = vcmp.gt.f32.partialorder %v881_v58, 0.0 }
 0x1f9   :  { %v2147_v2 = vpop.eup %2146  ;;  %v991_v3 = vmul.f32 1.442695, %v960_v62  ;;  %v1137_v4 = vmul.f32 %v2560_v39, %v1108_v63 }
 0x1fa   :  { %v1979_v6 = vadd.f32 -1.0, %v2147_v2  ;;  %v1102_v7 = vsel %vm952_vm15, %v923_v24, %v1077_v0 }
 0x1fb   :  { %2150 = vpow2.f32 %v991_v3  ;;  %v1170_v8 = vsel %vm455_vm4, %v1137_v4, 0.0  ;;  %v1127_v9 = vmul.f32 1.050701, %v1102_v7 }
 0x1fc   :  { %v1059_v11 = vmul.f32 1.6732632, %v1979_v6  ;;  %v882_v10 = vpop.f32.mrf.mxu2  ;;  %1171 = vadd.xlane.f32.xlu2 %v1170_v8  ;;  %1225 = vadd.xlane.f32.xlu1 %v1224_v5 }
 0x1fd   :  { %v2149_v13 = vpop.eup %2148  ;;  %v883_v14 = vadd.f32 %v2550_v12, %v882_v10  ;;  %v1156_v16 = vmul.f32 %v2560_v39, %v1127_v9 }
 0x1fe   :  { %v1998_v15 = vadd.f32 -1.0, %v2149_v13  ;;  %v1084_v20 = vsel %vm934_vm0, %v878_v34, %v1059_v11 }
 0x1ff   :  { %v961_v18 = vmin.f32 %v883_v14, 0.0  ;;  %v1227_v24 = vsel %vm455_vm4, %v1156_v16, 0.0  ;;  %v1109_v26 = vmul.f32 1.050701, %v1084_v20  ;;  %vm936_vm3 = vcmp.gt.f32.partialorder %v883_v14, 0.0 }
 0x200   :  { %v1078_v17 = vmul.f32 1.6732632, %v1998_v15  ;;  %v14_v20 = vstv %s3016_s8 }
 0x201   :  { %v2151_v21 = vpop.eup %2150  ;;  %v993_v22 = vmul.f32 1.442695, %v961_v18  ;;  %v1138_v33 = vmul.f32 %v2560_v39, %v1109_v26  ;;  %15 = vst [vmem:[#allocation2] sm:$0x1] %v14_v20 }
 0x202   :  { %v1980_v19 = vadd.f32 -1.0, %v2151_v21  ;;  %v1103_v23 = vsel %vm953_vm1, %v926_v47, %v1078_v17  ;;  %vm1815_vm1 = vcmask 15360  }
 0x203   :  { %2152 = vpow2.f32 %v993_v22  ;;  %v1128_v25 = vmul.f32 1.050701, %v1103_v23  ;;  %v1173_v38 = vsel %vm455_vm4, %v1138_v33, 0.0 }
 0x204   :  { %v1060_v27 = vmul.f32 1.6732632, %v1980_v19  ;;  %v885_v28 = vpop.f32.mrf.mxu2  ;;  %1228 = vadd.xlane.f32.xlu2 %v1227_v24 }
 0x205   :  { %v886_v40 = vadd.f32 %v2550_v12, %v885_v28  ;;  %v1157_v29 = vmul.f32 %v2560_v39, %v1128_v25 }
 0x206   :  { %v1085_v30 = vsel %vm935_vm2, %v881_v58, %v1060_v27 }
 0x207   :  { %v962_v31 = vmin.f32 %v886_v40, 0.0  ;;  %v1230_v32 = vsel %vm455_vm4, %v1157_v29, 0.0  ;;  %v1110_v34 = vmul.f32 1.050701, %v1085_v30  ;;  %vm937_vm5 = vcmp.gt.f32.partialorder %v886_v40, 0.0 }
 0x208   :  { %1231 = vadd.xlane.f32.xlu0 %v1230_v32 }
 0x209   :  { %v2153_v35 = vpop.eup %2152  ;;  %v995_v36 = vmul.f32 1.442695, %v962_v31  ;;  %v1139_v41 = vmul.f32 %v2560_v39, %v1110_v34 }
 0x20a   :  { %v1981_v37 = vadd.f32 -1.0, %v2153_v35 }
 0x20b   :  { %2154 = vpow2.f32 %v995_v36  ;;  %v1176_v47 = vsel %vm455_vm4, %v1139_v41, 0.0 }
 0x20c   :  { %v1061_v42 = vmul.f32 1.6732632, %v1981_v37  ;;  %v887_v43 = vpop.f32.mrf.mxu2  ;;  %1174 = vadd.xlane.f32.xlu2 %v1173_v38 }
 0x20d   :  { %v888_v44 = vadd.f32 %v2550_v12, %v887_v43 }
 0x20e   :  { %v1086_v45 = vsel %vm936_vm3, %v883_v14, %v1061_v42 }
 0x20f   :  { %v963_v46 = vmin.f32 %v888_v44, 0.0  ;;  %v1111_v48 = vmul.f32 1.050701, %v1086_v45  ;;  %vm938_vm6 = vcmp.gt.f32.partialorder %v888_v44, 0.0 }
 0x210   :  { %1177 = vadd.xlane.f32.xlu0 %v1176_v47 }
 0x211   :  { %v2155_v49 = vpop.eup %2154  ;;  %v997_v50 = vmul.f32 1.442695, %v963_v46  ;;  %v1140_v51 = vmul.f32 %v2560_v39, %v1111_v48 }
 0x212   :  { %v1982_v52 = vadd.f32 -1.0, %v2155_v49 }
 0x213   :  { %2156 = vpow2.f32 %v997_v50  ;;  %v1179_v53 = vsel %vm455_vm4, %v1140_v51, 0.0 }
 0x214   :  { %v1062_v54 = vmul.f32 1.6732632, %v1982_v52  ;;  %v890_v55 = vpop.f32.mrf.mxu2  ;;  %1180 = vadd.xlane.f32.xlu1 %v1179_v53 }
 0x215   :  { %v891_v56 = vadd.f32 %v2550_v12, %v890_v55 }
 0x216   :  { %v1087_v57 = vsel %vm937_vm5, %v886_v40, %v1062_v54 }
 0x217   :  { %v964_v58 = vmin.f32 %v891_v56, 0.0  ;;  %v1112_v59 = vmul.f32 1.050701, %v1087_v57  ;;  %vm939_vm7 = vcmp.gt.f32.partialorder %v891_v56, 0.0 }
 0x219   :  { %v2157_v60 = vpop.eup %2156  ;;  %v999_v61 = vmul.f32 1.442695, %v964_v58  ;;  %v1141_v62 = vmul.f32 %v2560_v39, %v1112_v59 }
 0x21a   :  { %v1983_v63 = vadd.f32 -1.0, %v2157_v60 }
 0x21b   :  { %2158 = vpow2.f32 %v999_v61  ;;  %v1182_v0 = vsel %vm455_vm4, %v1141_v62, 0.0 }
 0x21c   :  { %v1063_v1 = vmul.f32 1.6732632, %v1983_v63  ;;  %v892_v2 = vpop.f32.mrf.mxu2  ;;  %1183 = vadd.xlane.f32.xlu2 %v1182_v0 }
 0x21d   :  { %v893_v3 = vadd.f32 %v2550_v12, %v892_v2 }
 0x21e   :  { %v1088_v4 = vsel %vm938_vm6, %v888_v44, %v1063_v1 }
 0x21f   :  { %v965_v5 = vmin.f32 %v893_v3, 0.0  ;;  %v1113_v6 = vmul.f32 1.050701, %v1088_v4  ;;  %vm940_vm8 = vcmp.gt.f32.partialorder %v893_v3, 0.0 }
 0x221   :  { %v2159_v7 = vpop.eup %2158  ;;  %v1001_v8 = vmul.f32 1.442695, %v965_v5  ;;  %v1142_v9 = vmul.f32 %v2560_v39, %v1113_v6 }
 0x222   :  { %v1984_v11 = vadd.f32 -1.0, %v2159_v7 }
 0x223   :  { %2160 = vpow2.f32 %v1001_v8  ;;  %v1185_v10 = vsel %vm455_vm4, %v1142_v9, 0.0  ;;  %v2623_v8 = vld [vmem:[#allocation2] ss:$0 sm:$0xff] }
 0x224   :  { %v1064_v13 = vmul.f32 1.6732632, %v1984_v11  ;;  %v895_v14 = vpop.f32.mrf.mxu2  ;;  %1186 = vadd.xlane.f32.xlu0 %v1185_v10 }
 0x225   :  { %v896_v15 = vadd.f32 %v2550_v12, %v895_v14 }
 0x226   :  { %v1089_v18 = vsel %vm939_vm7, %v891_v56, %v1064_v13 }
 0x227   :  { %v966_v16 = vmin.f32 %v896_v15, 0.0  ;;  %v1114_v17 = vmul.f32 1.050701, %v1089_v18  ;;  %vm941_vm9 = vcmp.gt.f32.partialorder %v896_v15, 0.0 }
 0x229   :  { %v2161_v21 = vpop.eup %2160  ;;  %v1003_v22 = vmul.f32 1.442695, %v966_v16  ;;  %v1143_v19 = vmul.f32 %v2560_v39, %v1114_v17 }
 0x22a   :  { %v1985_v23 = vadd.f32 -1.0, %v2161_v21 }
 0x22b   :  { %2162 = vpow2.f32 %v1003_v22  ;;  %v1188_v24 = vsel %vm455_vm4, %v1143_v19, 0.0 }
 0x22c   :  { %v1065_v25 = vmul.f32 1.6732632, %v1985_v23  ;;  %v897_v26 = vpop.f32.mrf.mxu2  ;;  %1189 = vadd.xlane.f32.xlu1 %v1188_v24 }
 0x22d   :  { %v898_v27 = vadd.f32 %v2550_v12, %v897_v26 }
 0x22e   :  { %v1090_v28 = vsel %vm940_vm8, %v893_v3, %v1065_v25 }
 0x22f   :  { %v967_v40 = vmin.f32 %v898_v27, 0.0  ;;  %v1115_v29 = vmul.f32 1.050701, %v1090_v28  ;;  %vm942_vm10 = vcmp.gt.f32.partialorder %v898_v27, 0.0  ;;  %v2278_v28 = vmov 0  }
 0x230   :  { %2020 = vset.pattern.permute.xlu1 %v2278_v28  ;;  %2021 = vset.pattern.permute.xlu2 %v2278_v28 }
 0x231   :  { %v2163_v30 = vpop.eup %2162  ;;  %v1005_v31 = vmul.f32 1.442695, %v967_v40  ;;  %v1144_v32 = vmul.f32 %v2560_v39, %v1115_v29  ;;  %2022 = vset.pattern.permute.xlu0 %v2278_v28 }
 0x232   :  { %v1986_v33 = vadd.f32 -1.0, %v2163_v30 }
 0x233   :  { %2164 = vpow2.f32 %v1005_v31  ;;  %v1191_v34 = vsel %vm455_vm4, %v1144_v32, 0.0 }
 0x234   :  { %v1066_v35 = vmul.f32 1.6732632, %v1986_v33  ;;  %v900_v36 = vpop.f32.mrf.mxu2  ;;  %1192 = vadd.xlane.f32.xlu2 %v1191_v34 }
 0x235   :  { %v901_v37 = vadd.f32 %v2550_v12, %v900_v36 }
 0x236   :  { %v1091_v38 = vsel %vm941_vm9, %v896_v15, %v1066_v35 }
 0x237   :  { %v968_v41 = vmin.f32 %v901_v37, 0.0  ;;  %v1116_v42 = vmul.f32 1.050701, %v1091_v38  ;;  %vm943_vm11 = vcmp.gt.f32.partialorder %v901_v37, 0.0 }
 0x239   :  { %v2165_v43 = vpop.eup %2164  ;;  %v1007_v44 = vmul.f32 1.442695, %v968_v41  ;;  %v1145_v45 = vmul.f32 %v2560_v39, %v1116_v42 }
 0x23a   :  { %v1987_v46 = vadd.f32 -1.0, %v2165_v43 }
 0x23b   :  { %2166 = vpow2.f32 %v1007_v44  ;;  %v1194_v47 = vsel %vm455_vm4, %v1145_v45, 0.0 }
 0x23c   :  { %v1067_v48 = vmul.f32 1.6732632, %v1987_v46  ;;  %v902_v49 = vpop.f32.mrf.mxu2  ;;  %1195 = vadd.xlane.f32.xlu0 %v1194_v47 }
 0x23d   :  { %v903_v50 = vadd.f32 %v2550_v12, %v902_v49 }
 0x23e   :  { %v1092_v51 = vsel %vm942_vm10, %v898_v27, %v1067_v48 }
 0x23f   :  { %v969_v52 = vmin.f32 %v903_v50, 0.0  ;;  %v1117_v53 = vmul.f32 1.050701, %v1092_v51  ;;  %vm944_vm12 = vcmp.gt.f32.partialorder %v903_v50, 0.0 }
 0x241   :  { %v2167_v54 = vpop.eup %2166  ;;  %v1009_v55 = vmul.f32 1.442695, %v969_v52  ;;  %v1146_v56 = vmul.f32 %v2560_v39, %v1117_v53 }
 0x242   :  { %v1988_v57 = vadd.f32 -1.0, %v2167_v54 }
 0x243   :  { %2168 = vpow2.f32 %v1009_v55  ;;  %v1197_v58 = vsel %vm455_vm4, %v1146_v56, 0.0 }
 0x244   :  { %v1068_v59 = vmul.f32 1.6732632, %v1988_v57  ;;  %v905_v60 = vpop.f32.mrf.mxu2  ;;  %1198 = vadd.xlane.f32.xlu1 %v1197_v58 }
 0x245   :  { %v906_v61 = vadd.f32 %v2550_v12, %v905_v60 }
 0x246   :  { %v1093_v62 = vsel %vm943_vm11, %v901_v37, %v1068_v59 }
 0x247   :  { %v970_v63 = vmin.f32 %v906_v61, 0.0  ;;  %v1118_v0 = vmul.f32 1.050701, %v1093_v62  ;;  %vm945_vm13 = vcmp.gt.f32.partialorder %v906_v61, 0.0 }
 0x249   :  { %v2169_v1 = vpop.eup %2168  ;;  %v1011_v2 = vmul.f32 1.442695, %v970_v63  ;;  %v1147_v3 = vmul.f32 %v2560_v39, %v1118_v0 }
 0x24a   :  { %v1989_v4 = vadd.f32 -1.0, %v2169_v1 }
 0x24b   :  { %2170 = vpow2.f32 %v1011_v2  ;;  %v1200_v5 = vsel %vm455_vm4, %v1147_v3, 0.0 }
 0x24c   :  { %v1069_v6 = vmul.f32 1.6732632, %v1989_v4  ;;  %v907_v7 = vpop.f32.mrf.mxu2  ;;  %1201 = vadd.xlane.f32.xlu2 %v1200_v5 }
 0x24d   :  { %v908_v9 = vadd.f32 %v2550_v12, %v907_v7 }
 0x24e   :  { %v1094_v11 = vsel %vm944_vm12, %v903_v50, %v1069_v6 }
 0x24f   :  { %v971_v10 = vmin.f32 %v908_v9, 0.0  ;;  %v1160_v13 = vpop.xlane.xlu0 %1159  ;;  %v1119_v14 = vmul.f32 1.050701, %v1094_v11  ;;  %vm946_vm14 = vcmp.gt.f32.partialorder %v908_v9, 0.0 }
 0x250   :  { %v2627_v15 = vadd.f32 %v2623_v8, %v1160_v13 }
 0x251   :  { %v2171_v18 = vpop.eup %2170  ;;  %v1013_v16 = vmul.f32 1.442695, %v971_v10  ;;  %v1148_v17 = vmul.f32 %v2560_v39, %v1119_v14 }
 0x252   :  { %v1990_v20 = vadd.f32 -1.0, %v2171_v18  ;;  %v1287_v21 = vand.u32 2147483647, %v2627_v15 }
 0x253   :  { %2172 = vpow2.f32 %v1013_v16  ;;  %v1203_v22 = vsel %vm455_vm4, %v1148_v17, 0.0 }
 0x254   :  { %v1070_v19 = vmul.f32 1.6732632, %v1990_v20  ;;  %v1312_v23 = vsub.f32 0.0, %v1287_v21  ;;  %v910_v24 = vpop.f32.mrf.mxu2  ;;  %1204 = vadd.xlane.f32.xlu0 %v1203_v22  ;;  %v1262_v20 = vmax.f32 %v2627_v15, 0.0 }
 0x255   :  { %v911_v25 = vadd.f32 %v2550_v12, %v910_v24 }
 0x256   :  { %v1337_v26 = vmul.f32 1.442695, %v1312_v23  ;;  %v1095_v27 = vsel %vm945_vm13, %v906_v61, %v1070_v19 }
 0x257   :  { %v972_v40 = vmin.f32 %v911_v25, 0.0  ;;  %v1163_v29 = vpop.xlane.xlu0 %1162  ;;  %v1120_v30 = vmul.f32 1.050701, %v1095_v27  ;;  %vm947_vm15 = vcmp.gt.f32.partialorder %v911_v25, 0.0 }
 0x258   :  { %2174 = vpow2.f32 %v1337_v26  ;;  %v2634_v31 = vadd.f32 %v2623_v8, %v1163_v29 }
 0x259   :  { %v2173_v32 = vpop.eup %2172  ;;  %v1015_v33 = vmul.f32 1.442695, %v972_v40  ;;  %v1149_v34 = vmul.f32 %v2560_v39, %v1120_v30 }
 0x25a   :  { %v1991_v35 = vadd.f32 -1.0, %v2173_v32  ;;  %v1288_v36 = vand.u32 2147483647, %v2634_v31 }
 0x25b   :  { %2176 = vpow2.f32 %v1015_v33  ;;  %v1206_v37 = vsel %vm455_vm4, %v1149_v34, 0.0  ;;  %v1220_v41 = vpop.xlane.xlu2 %1219 }
 0x25c   :  { %v1071_v38 = vmul.f32 1.6732632, %v1991_v35  ;;  %1207 = vadd.xlane.f32.xlu1 %v1206_v37  ;;  %v2640_v42 = vadd.f32 %v2623_v8, %v1220_v41  ;;  %v1313_v44 = vsub.f32 0.0, %v1288_v36 }
 0x25e   :  { %v2175_v43 = vpop.eup %2174  ;;  %v1096_v45 = vsel %vm946_vm14, %v908_v9, %v1071_v38  ;;  %v1307_v47 = vand.u32 2147483647, %v2640_v42  ;;  %v1339_v54 = vmul.f32 1.442695, %v1313_v44 }
 0x25f   :  { %v1387_v46 = vadd.f32 1.0, %v2175_v43  ;;  %v1166_v48 = vpop.xlane.xlu1 %1165  ;;  %v1121_v50 = vmul.f32 1.050701, %v1096_v45  ;;  %v1282_v43 = vmax.f32 %v2640_v42, 0.0 }
 0x260   :  { %v2644_v49 = vadd.f32 %v2623_v8, %v1166_v48  ;;  %v1332_v52 = vsub.f32 0.0, %v1307_v47 }
 0x261   :  { %v2177_v51 = vpop.eup %2176  ;;  %2178 = vlog2.f32 %v1387_v46  ;;  %v1150_v57 = vmul.f32 %v2560_v39, %v1121_v50 }
 0x262   :  { %v1992_v53 = vadd.f32 -1.0, %v2177_v51  ;;  %v1289_v55 = vand.u32 2147483647, %v2644_v49  ;;  %v1377_v56 = vmul.f32 1.442695, %v1332_v52 }
 0x263   :  { %v1223_v60 = vpop.xlane.xlu0 %1222  ;;  %v1209_v62 = vsel %vm455_vm4, %v1150_v57, 0.0 }
 0x264   :  { %v1072_v58 = vmul.f32 1.6732632, %v1992_v53  ;;  %v1314_v59 = vsub.f32 0.0, %v1289_v55  ;;  %2180 = vpow2.f32 %v1377_v56  ;;  %v2649_v61 = vadd.f32 %v2623_v8, %v1223_v60  ;;  %1210 = vadd.xlane.f32.xlu2 %v1209_v62 }
 0x265   :  { %2182 = vpow2.f32 %v1339_v54  ;;  %v1263_v56 = vmax.f32 %v2634_v31, 0.0 }
 0x266   :  { %v1341_v63 = vmul.f32 1.442695, %v1314_v59  ;;  %v1097_v0 = vsel %vm947_vm15, %v911_v25, %v1072_v58  ;;  %v1308_v1 = vand.u32 2147483647, %v2649_v61  ;;  %v912_v25 = vpop.f32.mrf.mxu2 }
 0x267   :  { %v1169_v2 = vpop.xlane.xlu1 %1168  ;;  %v1122_v3 = vmul.f32 1.050701, %v1097_v0  ;;  %v2179_v4 = vpop.eup %2178  ;;  %v2667_v30 = vadd.f32 %v2550_v12, %v912_v25 }
 0x268   :  { %2184 = vpow2.f32 %v1341_v63  ;;  %v2654_v5 = vadd.f32 %v2623_v8, %v1169_v2  ;;  %v1333_v6 = vsub.f32 0.0, %v1308_v1  ;;  %v1413_v14 = vmul.f32 0.6931472, %v2179_v4 }
 0x269   :  { %v1151_v7 = vmul.f32 %v2560_v39, %v1122_v3  ;;  %v973_v37 = vmin.f32 %v2667_v30, 0.0  ;;  %v1264_v63 = vmax.f32 %v2644_v49, 0.0  ;;  %vm948_vm0 = vcmp.gt.f32.partialorder %v2667_v30, 0.0 }
 0x26a   :  { %v1290_v9 = vand.u32 2147483647, %v2654_v5  ;;  %v2181_v11 = vpop.eup %2180  ;;  %v1379_v10 = vmul.f32 1.442695, %v1333_v6  ;;  %v1462_v24 = vadd.f32 %v1413_v14, %v1262_v20 }
 0x26b   :  { %v1212_v13 = vsel %vm455_vm4, %v1151_v7, 0.0  ;;  %v2183_v18 = vpop.eup %2182  ;;  %v1407_v16 = vadd.f32 1.0, %v2181_v11  ;;  %v1017_v50 = vmul.f32 1.442695, %v973_v37 }
 0x26c   :  { %v1315_v17 = vsub.f32 0.0, %v1290_v9  ;;  %1213 = vadd.xlane.f32.xlu0 %v1212_v13  ;;  %2186 = vpow2.f32 %v1379_v10  ;;  %v1388_v22 = vadd.f32 1.0, %v2183_v18  ;;  %v1490_v32 = vsub.f32 0.0, %v1462_v24 }
 0x26d   :  { %2188 = vlog2.f32 %v1407_v16  ;;  %v1515_v54 = vsub.f32 %v2627_v15, %v1462_v24 }
 0x26e   :  { %v2185_v21 = vpop.eup %2184  ;;  %v1343_v26 = vmul.f32 1.442695, %v1315_v17  ;;  %2190 = vlog2.f32 %v1388_v22  ;;  %v1283_v17 = vmax.f32 %v2649_v61, 0.0 }
 0x26f   :  { %v2660_v19 = vpop.xlane.xlu2 %1171  ;;  %v1226_v23 = vpop.xlane.xlu1 %1225  ;;  %v1389_v28 = vadd.f32 1.0, %v2185_v21 }
 0x270   :  { %v2663_v27 = vadd.f32 %v2623_v8, %v1226_v23  ;;  %2192 = vpow2.f32 %v1343_v26 }
 0x271   :  { %2194 = vlog2.f32 %v1389_v28 }
 0x272   :  { %v1309_v40 = vand.u32 2147483647, %v2663_v27  ;;  %v2187_v29 = vpop.eup %2186 }
 0x273   :  { %v2189_v33 = vpop.eup %2188  ;;  %v1408_v38 = vadd.f32 1.0, %v2187_v29 }
 0x274   :  { %v1334_v34 = vsub.f32 0.0, %v1309_v40  ;;  %v1453_v36 = vmul.f32 0.6931472, %v2189_v33  ;;  %v2191_v45 = vpop.eup %2190 }
 0x275   :  { %1542 = vperm.xlu1 %2020, %v1490_v32   ;;  %v1415_v55 = vmul.f32 0.6931472, %v2191_v45  ;;  %v1284_v32 = vmax.f32 %v2663_v27, 0.0  ;;  %v1265_v45 = vmax.f32 %v2654_v5, 0.0 }
 0x276   :  { %v1381_v35 = vmul.f32 1.442695, %v1334_v34  ;;  %v2193_v12 = vpop.eup %2192  ;;  %v2675_v47 = vadd.f32 %v1453_v36, %v1282_v43 }
 0x277   :  { %v1229_v41 = vpop.xlane.xlu2 %1228  ;;  %v2195_v48 = vpop.eup %2194  ;;  %v1390_v57 = vadd.f32 1.0, %v2193_v12  ;;  %v2689_v3 = vadd.f32 %v1415_v55, %v1263_v56 }
 0x278   :  { %v2672_v44 = vadd.f32 %v2623_v8, %v1229_v41  ;;  %2196 = vpow2.f32 %v1381_v35  ;;  %v1535_v60 = vsub.f32 %v2640_v42, %v2675_v47  ;;  %v1417_v62 = vmul.f32 0.6931472, %v2195_v48 }
 0x279   :  { %2198 = vlog2.f32 %v1408_v38  ;;  %v1491_v13 = vsub.f32 0.0, %v2689_v3 }
 0x27a   :  { %v1310_v46 = vand.u32 2147483647, %v2672_v44  ;;  %2200 = vpow2.f32 %v1017_v50  ;;  %v1464_v9 = vadd.f32 %v1417_v62, %v1264_v63 }
 0x27b   :  { %v1232_v51 = vpop.xlane.xlu0 %1231 }
 0x27c   :  { %v1335_v52 = vsub.f32 0.0, %v1310_v46  ;;  %v2678_v53 = vadd.f32 %v2623_v8, %v1232_v51  ;;  %1667 = vperm.xlu2 %2021, %v1515_v54   ;;  %v1492_v22 = vsub.f32 0.0, %v1464_v9  ;;  %v1517_v48 = vsub.f32 %v2644_v49, %v1464_v9 }
 0x27d   :  { %v1285_v54 = vmax.f32 %v2672_v44, 0.0 }
 0x27e   :  { %v1383_v58 = vmul.f32 1.442695, %v1335_v52  ;;  %v1311_v59 = vand.u32 2147483647, %v2678_v53  ;;  %v2197_v1 = vpop.eup %2196 }
 0x27f   :  { %v1175_v0 = vpop.xlane.xlu2 %1174  ;;  %v2199_v4 = vpop.eup %2198  ;;  %v1409_v6 = vadd.f32 1.0, %v2197_v1 }
 0x280   :  { %2202 = vpow2.f32 %v1383_v58  ;;  %v1336_v2 = vsub.f32 0.0, %v1311_v59  ;;  %v2687_v15 = vadd.f32 %v2623_v8, %v1175_v0  ;;  %1767 = vperm.xlu0 %2022, %v1535_v60   ;;  %v1455_v14 = vmul.f32 0.6931472, %v2199_v4  ;;  %v2201_v18 = vpop.eup %2200 }
 0x281   :  { %2204 = vlog2.f32 %v1390_v57  ;;  %v1993_v28 = vadd.f32 -1.0, %v2201_v18  ;;  %v1286_v58 = vmax.f32 %v2678_v53, 0.0 }
 0x282   :  { %v1385_v7 = vmul.f32 1.442695, %v1336_v2  ;;  %v1292_v42 = vand.u32 2147483647, %v2687_v15  ;;  %2206 = vlog2.f32 %v1409_v6  ;;  %v1483_v25 = vadd.f32 %v1455_v14, %v1283_v17 }
 0x283   :  { %v1178_v11 = vpop.xlane.xlu0 %1177  ;;  %v1073_v38 = vmul.f32 1.6732632, %v1993_v28  ;;  %v1267_v18 = vmax.f32 %v2687_v15, 0.0 }
 0x284   :  { %2208 = vpow2.f32 %v1385_v7  ;;  %v1317_v10 = vsub.f32 0.0, %v1292_v42  ;;  %v2695_v21 = vadd.f32 %v2623_v8, %v1178_v11  ;;  %1547 = vperm.xlu2 %2021, %v1491_v13   ;;  %v1536_v36 = vsub.f32 %v2649_v61, %v1483_v25 }
 0x285   :  { %v1098_v49 = vsel %vm948_vm0, %v2667_v30, %v1073_v38  ;;  %v1511_v7 = vsub.f32 0.0, %v1483_v25  ;;  %v2726_v13 = vadd.f32 %v2623_v8, %v2660_v19 }
 0x286   :  { %v2203_v16 = vpop.eup %2202  ;;  %v1347_v20 = vmul.f32 1.442695, %v1317_v10  ;;  %v1293_v29 = vand.u32 2147483647, %v2695_v21  ;;  %v1123_v42 = vmul.f32 1.050701, %v1098_v49 }
 0x287   :  { %v1410_v23 = vadd.f32 1.0, %v2203_v16  ;;  %v2205_v24 = vpop.eup %2204  ;;  %v1181_v34 = vpop.xlane.xlu1 %1180 }
 0x288   :  { %2210 = vpow2.f32 %v1347_v20  ;;  %1552 = vperm.xlu0 %2022, %v1492_v22   ;;  %v2207_v26 = vpop.eup %2206  ;;  %v1419_v37 = vmul.f32 0.6931472, %v2205_v24  ;;  %v1318_v12 = vsub.f32 0.0, %v1293_v29  ;;  %v2704_v46 = vadd.f32 %v2623_v8, %v1181_v34 }
 0x289   :  { %2212 = vlog2.f32 %v1410_v23  ;;  %v1457_v35 = vmul.f32 0.6931472, %v2207_v26  ;;  %v1152_v24 = vmul.f32 %v2560_v39, %v1123_v42  ;;  %v1291_v26 = vand.u32 2147483647, %v2726_v13 }
 0x28a   :  { %v2209_v40 = vpop.eup %2208  ;;  %v1465_v56 = vadd.f32 %v1419_v37, %v1265_v45  ;;  %v1349_v59 = vmul.f32 1.442695, %v1318_v12  ;;  %v1294_v60 = vand.u32 2147483647, %v2704_v46  ;;  %v1268_v42 = vmax.f32 %v2695_v21, 0.0 }
 0x28b   :  { %v1411_v33 = vadd.f32 1.0, %v2209_v40  ;;  %v2700_v41 = vadd.f32 %v1457_v35, %v1284_v32  ;;  %v1316_v39 = vsub.f32 0.0, %v1291_v26 }
 0x28c   :  { %1772 = vperm.xlu2 %2021, %v1536_v36   ;;  %v1493_v2 = vsub.f32 0.0, %v1465_v56  ;;  %v1319_v9 = vsub.f32 0.0, %v1294_v60  ;;  %v1518_v40 = vsub.f32 %v2654_v5, %v1465_v56 }
 0x28d   :  { %2214 = vlog2.f32 %v1411_v33  ;;  %v1537_v52 = vsub.f32 %v2663_v27, %v2700_v41  ;;  %v1215_v33 = vsel %vm455_vm4, %v1152_v24, 0.0  ;;  %v1345_v45 = vmul.f32 1.442695, %v1316_v39 }
 0x28e   :  { %v2211_v43 = vpop.eup %2210  ;;  %v1351_v22 = vmul.f32 1.442695, %v1319_v9  ;;  %v1512_v12 = vsub.f32 0.0, %v2700_v41 }
 0x28f   :  { %v2213_v50 = vpop.eup %2212  ;;  %v1392_v51 = vadd.f32 1.0, %v2211_v43  ;;  %v1184_v61 = vpop.xlane.xlu2 %1183 }
 0x290   :  { %v2712_v55 = vadd.f32 %v2623_v8, %v1184_v61  ;;  %1677 = vperm.xlu0 %2022, %v1517_v48   ;;  %v1459_v57 = vmul.f32 0.6931472, %v2213_v50 }
 0x291   :  { %2216 = vlog2.f32 %v1392_v51 }
 0x292   :  { %v1295_v62 = vand.u32 2147483647, %v2712_v55  ;;  %v2718_v63 = vadd.f32 %v1459_v57, %v1285_v54  ;;  %2218 = vpow2.f32 %v1349_v59  ;;  %v1270_v57 = vmax.f32 %v2712_v55, 0.0 }
 0x293   :  { %v2215_v0 = vpop.eup %2214 }
 0x294   :  { %v1320_v1 = vsub.f32 0.0, %v1295_v62  ;;  %v1461_v4 = vmul.f32 0.6931472, %v2215_v0  ;;  %v1538_v6 = vsub.f32 %v2672_v44, %v2718_v63  ;;  %1557 = vperm.xlu2 %2021, %v1493_v2  }
 0x296   :  { %v1353_v11 = vmul.f32 1.442695, %v1320_v1  ;;  %v2722_v30 = vadd.f32 %v1461_v4, %v1286_v58 }
 0x297   :  { %v2217_v10 = vpop.eup %2216  ;;  %v1187_v14 = vpop.xlane.xlu0 %1186 }
 0x298   :  { %2220 = vpow2.f32 %v1353_v11  ;;  %v2730_v16 = vadd.f32 %v2623_v8, %v1187_v14  ;;  %1647 = vperm.xlu0 %2022, %v1511_v7   ;;  %v1423_v17 = vmul.f32 0.6931472, %v2217_v10  ;;  %v1539_v20 = vsub.f32 %v2678_v53, %v2722_v30  ;;  %v2219_v19 = vpop.eup %2218 }
 0x299   :  { %2222 = vpow2.f32 %v1351_v22  ;;  %v1393_v35 = vadd.f32 1.0, %v2219_v19  ;;  %v1514_v50 = vsub.f32 0.0, %v2722_v30 }
 0x29a   :  { %v1296_v23 = vand.u32 2147483647, %v2730_v16  ;;  %v1467_v25 = vadd.f32 %v1423_v17, %v1267_v18  ;;  %v1271_v14 = vmax.f32 %v2730_v16, 0.0 }
 0x29c   :  { %v1321_v28 = vsub.f32 0.0, %v1296_v23  ;;  %1682 = vperm.xlu2 %2021, %v1518_v40   ;;  %v1520_v34 = vsub.f32 %v2687_v15, %v1467_v25  ;;  %v1495_v2 = vsub.f32 0.0, %v1467_v25 }
 0x29e   :  { %v2221_v29 = vpop.eup %2220  ;;  %v1355_v32 = vmul.f32 1.442695, %v1321_v28 }
 0x29f   :  { %v1395_v36 = vadd.f32 1.0, %v2221_v29  ;;  %v1190_v37 = vpop.xlane.xlu1 %1189  ;;  %1216 = vadd.xlane.f32.xlu1 %v1215_v33  ;;  %v2223_v43 = vpop.eup %2222  ;;  %v1269_v33 = vmax.f32 %v2704_v46, 0.0 }
 0x2a0   :  { %2224 = vpow2.f32 %v1355_v32  ;;  %v2741_v38 = vadd.f32 %v2623_v8, %v1190_v37  ;;  %1692 = vperm.xlu0 %2022, %v1520_v34   ;;  %v1394_v61 = vadd.f32 1.0, %v2223_v43 }
 0x2a1   :  { %2226 = vlog2.f32 %v1395_v36 }
 0x2a2   :  { %v1297_v5 = vand.u32 2147483647, %v2741_v38  ;;  %2228 = vlog2.f32 %v1393_v35  ;;  %v1516_v35 = vsub.f32 %v2634_v31, %v2689_v3 }
 0x2a3   :  { %2230 = vpow2.f32 %v1345_v45 }
 0x2a4   :  { %v1322_v15 = vsub.f32 0.0, %v1297_v5  ;;  %1652 = vperm.xlu2 %2021, %v1512_v12  }
 0x2a6   :  { %v2225_v48 = vpop.eup %2224  ;;  %v1357_v60 = vmul.f32 1.442695, %v1322_v15 }
 0x2a7   :  { %v2227_v51 = vpop.eup %2226  ;;  %v1396_v54 = vadd.f32 1.0, %v2225_v48  ;;  %v1193_v56 = vpop.xlane.xlu2 %1192 }
 0x2a8   :  { %v2748_v58 = vadd.f32 %v2623_v8, %v1193_v56  ;;  %1662 = vperm.xlu0 %2022, %v1514_v50   ;;  %v1429_v49 = vmul.f32 0.6931472, %v2227_v51  ;;  %v2229_v59 = vpop.eup %2228  ;;  %v1510_v50 = vsub.f32 0.0, %v2675_v47 }
 0x2a9   :  { %2232 = vlog2.f32 %v1396_v54  ;;  %v1425_v4 = vmul.f32 0.6931472, %v2229_v59  ;;  %v2231_v7 = vpop.eup %2230  ;;  %v1266_v54 = vmax.f32 %v2726_v13, 0.0 }
 0x2aa   :  { %v1298_v62 = vand.u32 2147483647, %v2748_v58  ;;  %v2751_v0 = vadd.f32 %v1429_v49, %v1270_v57  ;;  %2234 = vlog2.f32 %v1394_v61  ;;  %v1391_v25 = vadd.f32 1.0, %v2231_v7 }
 0x2ab   :  { %2236 = vpow2.f32 %v1357_v60  ;;  %v2760_v22 = vadd.f32 %v1425_v4, %v1268_v42  ;;  %v1273_v49 = vmax.f32 %v2748_v58, 0.0 }
 0x2ac   :  { %v1323_v1 = vsub.f32 0.0, %v1298_v62  ;;  %1567 = vperm.xlu2 %2021, %v1495_v2   ;;  %v1523_v11 = vsub.f32 %v2712_v55, %v2751_v0 }
 0x2ad   :  { %v1521_v55 = vsub.f32 %v2695_v21, %v2760_v22 }
 0x2ae   :  { %v1359_v9 = vmul.f32 1.442695, %v1323_v1 }
 0x2af   :  { %v2233_v10 = vpop.eup %2232  ;;  %v1196_v18 = vpop.xlane.xlu0 %1195 }
 0x2b0   :  { %2238 = vpow2.f32 %v1359_v9  ;;  %v2758_v17 = vadd.f32 %v2623_v8, %v1196_v18  ;;  %1707 = vperm.xlu0 %2022, %v1523_v11   ;;  %v1431_v23 = vmul.f32 0.6931472, %v2233_v10  ;;  %v2235_v24 = vpop.eup %2234  ;;  %v1272_v10 = vmax.f32 %v2741_v38, 0.0 }
 0x2b1   :  { %v2237_v28 = vpop.eup %2236  ;;  %v1427_v29 = vmul.f32 0.6931472, %v2235_v24  ;;  %2240 = vlog2.f32 %v1391_v25 }
 0x2b2   :  { %v1299_v19 = vand.u32 2147483647, %v2758_v17  ;;  %v1471_v26 = vadd.f32 %v1431_v23, %v1271_v14  ;;  %v1397_v37 = vadd.f32 1.0, %v2237_v28  ;;  %v1274_v24 = vmax.f32 %v2758_v17, 0.0 }
 0x2b3   :  { %v2771_v21 = vadd.f32 %v1427_v29, %v1269_v33 }
 0x2b4   :  { %v1324_v40 = vsub.f32 0.0, %v1299_v19  ;;  %1697 = vperm.xlu2 %2021, %v1521_v55   ;;  %v1499_v36 = vsub.f32 0.0, %v1471_v26  ;;  %v1524_v7 = vsub.f32 %v2730_v16, %v1471_v26 }
 0x2b5   :  { %v1497_v31 = vsub.f32 0.0, %v2771_v21 }
 0x2b6   :  { %v2239_v32 = vpop.eup %2238  ;;  %v1361_v34 = vmul.f32 1.442695, %v1324_v40 }
 0x2b7   :  { %v1398_v39 = vadd.f32 1.0, %v2239_v32  ;;  %v1199_v5 = vpop.xlane.xlu1 %1198  ;;  %v2241_v12 = vpop.eup %2240 }
 0x2b8   :  { %2242 = vpow2.f32 %v1361_v34  ;;  %v2769_v43 = vadd.f32 %v2623_v8, %v1199_v5  ;;  %1672 = vperm.xlu1 %2020, %v1516_v35   ;;  %1587 = vperm.xlu0 %2022, %v1499_v36   ;;  %v1421_v51 = vmul.f32 0.6931472, %v2241_v12 }
 0x2b9   :  { %2244 = vlog2.f32 %v1398_v39 }
 0x2ba   :  { %v1300_v45 = vand.u32 2147483647, %v2769_v43  ;;  %2246 = vlog2.f32 %v1397_v37  ;;  %v1466_v47 = vadd.f32 %v1421_v51, %v1266_v54 }
 0x2bc   :  { %v1325_v48 = vsub.f32 0.0, %v1300_v45  ;;  %1577 = vperm.xlu2 %2021, %v1497_v31   ;;  %v1494_v18 = vsub.f32 0.0, %v1466_v47  ;;  %v1519_v35 = vsub.f32 %v2726_v13, %v1466_v47  ;;  %v1513_v13 = vsub.f32 0.0, %v2718_v63 }
 0x2be   :  { %v2243_v3 = vpop.eup %2242  ;;  %v1363_v15 = vmul.f32 1.442695, %v1325_v48 }
 0x2bf   :  { %v2245_v61 = vpop.eup %2244  ;;  %v1399_v56 = vadd.f32 1.0, %v2243_v3  ;;  %v1202_v57 = vpop.xlane.xlu2 %1201 }
 0x2c0   :  { %2248 = vpow2.f32 %v1363_v15  ;;  %v2779_v59 = vadd.f32 %v2623_v8, %v1202_v57  ;;  %1642 = vperm.xlu1 %2020, %v1510_v50   ;;  %v1435_v60 = vmul.f32 0.6931472, %v2245_v61  ;;  %v2247_v62 = vpop.eup %2246  ;;  %v1275_v15 = vmax.f32 %v2769_v43, 0.0 }
 0x2c1   :  { %2250 = vlog2.f32 %v1399_v56  ;;  %v1433_v9 = vmul.f32 0.6931472, %v2247_v62 }
 0x2c2   :  { %v1301_v1 = vand.u32 2147483647, %v2779_v59  ;;  %v2782_v2 = vadd.f32 %v1435_v60, %v1273_v49  ;;  %v1276_v54 = vmax.f32 %v2779_v59, 0.0 }
 0x2c3   :  { %v2792_v16 = vadd.f32 %v1433_v9, %v1272_v10  ;;  %v1496_v9 = vsub.f32 0.0, %v2760_v22 }
 0x2c4   :  { %v1326_v4 = vsub.f32 0.0, %v1301_v1  ;;  %v1526_v42 = vsub.f32 %v2748_v58, %v2782_v2  ;;  %1712 = vperm.xlu2 %2021, %v1524_v7  }
 0x2c5   :  { %v1500_v29 = vsub.f32 0.0, %v2792_v16 }
 0x2c6   :  { %v2249_v11 = vpop.eup %2248  ;;  %v1365_v14 = vmul.f32 1.442695, %v1326_v4  ;;  %1722 = vperm.xlu0 %2022, %v1526_v42   ;;  %v1487_v4 = vlaneseq }
 0x2c7   :  { %v2251_v23 = vpop.eup %2250  ;;  %v1400_v25 = vadd.f32 1.0, %v2249_v11  ;;  %v1205_v19 = vpop.xlane.xlu0 %1204 }
 0x2c8   :  { %2252 = vpow2.f32 %v1365_v14  ;;  %v2790_v28 = vadd.f32 %v2623_v8, %v1205_v19  ;;  %1562 = vperm.xlu1 %2020, %v1494_v18   ;;  %v1437_v58 = vmul.f32 0.6931472, %v2251_v23 }
 0x2c9   :  { %2254 = vlog2.f32 %v1400_v25 }
 0x2ca   :  { %v1302_v26 = vand.u32 2147483647, %v2790_v28  ;;  %v1474_v40 = vadd.f32 %v1437_v58, %v1274_v24  ;;  %v1277_v18 = vmax.f32 %v2790_v28, 0.0 }
 0x2cc   :  { %v1327_v55 = vsub.f32 0.0, %v1302_v26  ;;  %v1502_v32 = vsub.f32 0.0, %v1474_v40  ;;  %1592 = vperm.xlu2 %2021, %v1500_v29   ;;  %v1527_v48 = vsub.f32 %v2758_v17, %v1474_v40 }
 0x2ce   :  { %v2253_v33 = vpop.eup %2252  ;;  %v1367_v34 = vmul.f32 1.442695, %v1327_v55  ;;  %1602 = vperm.xlu0 %2022, %v1502_v32   ;;  %v1522_v32 = vsub.f32 %v2704_v46, %v2771_v21 }
 0x2cf   :  { %v1401_v36 = vadd.f32 1.0, %v2253_v33  ;;  %v1208_v37 = vpop.xlane.xlu1 %1207  ;;  %v2255_v5 = vpop.eup %2254 }
 0x2d0   :  { %2256 = vpow2.f32 %v1367_v34  ;;  %v2798_v39 = vadd.f32 %v2623_v8, %v1208_v37  ;;  %1687 = vperm.xlu1 %2020, %v1519_v35   ;;  %v1439_v31 = vmul.f32 0.6931472, %v2255_v5 }
 0x2d1   :  { %2258 = vlog2.f32 %v1401_v36 }
 0x2d2   :  { %v1303_v45 = vand.u32 2147483647, %v2798_v39  ;;  %v2805_v56 = vadd.f32 %v1439_v31, %v1275_v15  ;;  %v1278_v36 = vmax.f32 %v2798_v39, 0.0 }
 0x2d4   :  { %v1328_v12 = vsub.f32 0.0, %v1303_v45  ;;  %1727 = vperm.xlu2 %2021, %v1527_v48   ;;  %v1503_v1 = vsub.f32 0.0, %v2805_v56  ;;  %v1498_v48 = vsub.f32 0.0, %v2751_v0 }
 0x2d6   :  { %v2257_v3 = vpop.eup %2256  ;;  %v1369_v50 = vmul.f32 1.442695, %v1328_v12 }
 0x2d7   :  { %v2259_v51 = vpop.eup %2258  ;;  %v1402_v61 = vadd.f32 1.0, %v2257_v3  ;;  %v1211_v49 = vpop.xlane.xlu2 %1210 }
 0x2d8   :  { %2260 = vpow2.f32 %v1369_v50  ;;  %1657 = vperm.xlu1 %2020, %v1513_v13   ;;  %v1441_v57 = vmul.f32 0.6931472, %v2259_v51  ;;  %v2808_v17 = vadd.f32 %v2623_v8, %v1211_v49 }
 0x2d9   :  { %2262 = vlog2.f32 %v1402_v61 }
 0x2da   :  { %v2810_v60 = vadd.f32 %v1441_v57, %v1276_v54  ;;  %v1304_v62 = vand.u32 2147483647, %v2808_v17  ;;  %v1279_v50 = vmax.f32 %v2808_v17, 0.0  ;;  %v1525_v57 = vsub.f32 %v2741_v38, %v2792_v16 }
 0x2dc   :  { %v1529_v47 = vsub.f32 %v2779_v59, %v2810_v60  ;;  %v1329_v42 = vsub.f32 0.0, %v1304_v62  ;;  %1607 = vperm.xlu2 %2021, %v1503_v1   ;;  %v2819_v59 = vand.u32 127, %v1487_v4 }
 0x2de   :  { %v2261_v7 = vpop.eup %2260  ;;  %1737 = vperm.xlu0 %2022, %v1529_v47   ;;  %v1371_v23 = vmul.f32 1.442695, %v1329_v42  ;;  %vm1489_vm4 = vcmp.eq.s32.totalorder %v2819_v59, 0 }
 0x2df   :  { %v2263_v11 = vpop.eup %2262  ;;  %v1403_v10 = vadd.f32 1.0, %v2261_v7  ;;  %v1214_v14 = vpop.xlane.xlu0 %1213 }
 0x2e0   :  { %v1255_v24 = vadd.f32 %v2623_v8, %v1214_v14  ;;  %1572 = vperm.xlu1 %2020, %v1496_v9   ;;  %v1443_v25 = vmul.f32 0.6931472, %v2263_v11  ;;  %v1668_v19 = vpop.permute.xlu2 %1667  ;;  %v1501_v9 = vsub.f32 0.0, %v2782_v2  ;;  %v1528_v2 = vsub.f32 %v2769_v43, %v2805_v56 }
 0x2e1   :  { %2264 = vlog2.f32 %v1403_v10 }
 0x2e2   :  { %2266 = vpow2.f32 %v1371_v23  ;;  %v1305_v58 = vand.u32 2147483647, %v1255_v24  ;;  %v1477_v26 = vadd.f32 %v1443_v25, %v1277_v18  ;;  %v1280_v62 = vmax.f32 %v1255_v24, 0.0 }
 0x2e3   :  { %v1504_v23 = vsub.f32 0.0, %v2810_v60 }
 0x2e4   :  { %v1330_v40 = vsub.f32 0.0, %v1305_v58  ;;  %v1530_v22 = vsub.f32 %v2790_v28, %v1477_v26  ;;  %v1505_v55 = vsub.f32 0.0, %v1477_v26 }
 0x2e6   :  { %v1373_v29 = vmul.f32 1.442695, %v1330_v40  ;;  %1742 = vperm.xlu2 %2021, %v1530_v22   ;;  %1617 = vperm.xlu0 %2022, %v1505_v55  }
 0x2e7   :  { %v2265_v33 = vpop.eup %2264  ;;  %v1543_v34 = vpop.permute.xlu1 %1542 }
 0x2e8   :  { %v2267_v35 = vpop.eup %2266  ;;  %2268 = vpow2.f32 %v1373_v29  ;;  %v1790_v37 = vsel %vm1489_vm4, %v1543_v34, %v1668_v19  ;;  %1702 = vperm.xlu1 %2020, %v1522_v32   ;;  %v1445_v28 = vmul.f32 0.6931472, %v2265_v33  ;;  %v2832_v45 = vpop.permute.xlu2 %1547 }
 0x2e9   :  { %v1404_v5 = vadd.f32 1.0, %v2267_v35  ;;  %1816 = vst.msk [vmem:[%s3017_s9] sm:$0xff] %vm1815_vm1, %v1790_v37 }
 0x2ea   :  { %v1478_v46 = vadd.f32 %v1445_v28, %v1278_v36 }
 0x2eb   :  { %2270 = vlog2.f32 %v1404_v5 }
 0x2ec   :  { %v1506_v21 = vsub.f32 0.0, %v1478_v46  ;;  %v1531_v25 = vsub.f32 %v2798_v39, %v1478_v46 }
 0x2ee   :  { %v2269_v12 = vpop.eup %2268  ;;  %1622 = vperm.xlu2 %2021, %v1506_v21  }
 0x2ef   :  { %v1405_v31 = vadd.f32 1.0, %v2269_v12 }
 0x2f0   :  { %1582 = vperm.xlu1 %2020, %v1498_v48   ;;  %v1773_v15 = vpop.permute.xlu2 %1772 }
 0x2f1   :  { %v2271_v3 = vpop.eup %2270  ;;  %2272 = vlog2.f32 %v1405_v31 }
 0x2f2   :  { %v2836_v13 = vpop.permute.xlu0 %1767  ;;  %v1447_v51 = vmul.f32 0.6931472, %v2271_v3 }
 0x2f4   :  { %v1479_v61 = vadd.f32 %v1447_v51, %v1279_v50 }
 0x2f6   :  { %v1532_v54 = vsub.f32 %v2808_v17, %v1479_v61  ;;  %v1507_v40 = vsub.f32 0.0, %v1479_v61 }
 0x2f7   :  { %v2273_v49 = vpop.eup %2272 }
 0x2f8   :  { %1752 = vperm.xlu0 %2022, %v1532_v54   ;;  %1717 = vperm.xlu1 %2020, %v1525_v57   ;;  %v1449_v0 = vmul.f32 0.6931472, %v2273_v49  ;;  %v1558_v1 = vpop.permute.xlu2 %1557 }
 0x2fa   :  { %v1553_v47 = vpop.permute.xlu0 %1552  ;;  %v1480_v4 = vadd.f32 %v1449_v0, %v1280_v62 }
 0x2fc   :  { %v1533_v7 = vsub.f32 %v1255_v24, %v1480_v4  ;;  %v1508_v42 = vsub.f32 0.0, %v1480_v4 }
 0x2fe   :  { %1757 = vperm.xlu2 %2021, %v1533_v7  }
 0x300   :  { %1632 = vperm.xlu0 %2022, %v1508_v42   ;;  %1597 = vperm.xlu1 %2020, %v1501_v9   ;;  %v1683_v11 = vpop.permute.xlu2 %1682 }
 0x301   :  { %v1793_v17 = vsel %vm1489_vm4, %v1558_v1, %v1683_v11 }
 0x302   :  { %v1678_v38 = vpop.permute.xlu0 %1677  ;;  %1819 = vst.msk [vmem:[%s3017_s9 + $0x18] sm:$0xff] %vm1815_vm1, %v1793_v17 }
 0x303   :  { %v1792_v16 = vsel %vm1489_vm4, %v1553_v47, %v1678_v38 }
 0x304   :  { %1818 = vst.msk [vmem:[%s3017_s9 + $0x10] sm:$0xff] %vm1815_vm1, %v1792_v16 }
 0x308   :  { %1782 = vperm.xlu0 %2022, %v1538_v6   ;;  %1732 = vperm.xlu1 %2020, %v1528_v2   ;;  %v2859_v10 = vpop.permute.xlu2 %1652 }
 0x30a   :  { %v1648_v14 = vpop.permute.xlu0 %1647 }
 0x30b   :  { %v1811_v18 = vsel %vm1489_vm4, %v1648_v14, %v1773_v15 }
 0x30c   :  { %1837 = vst.msk [vmem:[%s3017_s9 + $0xa8] sm:$0xff] %vm1815_vm1, %v1811_v18 }
 0x310   :  { %1612 = vperm.xlu1 %2020, %v1504_v23   ;;  %v1568_v43 = vpop.permute.xlu2 %1567 }
 0x312   :  { %v1217_v56 = vpop.xlane.xlu1 %1216  ;;  %v1693_v24 = vpop.permute.xlu0 %1692 }
 0x313   :  { %v1256_v44 = vadd.f32 %v2623_v8, %v1217_v56  ;;  %v1795_v63 = vsel %vm1489_vm4, %v1568_v43, %v1693_v24 }
 0x314   :  { %1821 = vst.msk [vmem:[%s3017_s9 + $0x28] sm:$0xff] %vm1815_vm1, %v1795_v63 }
 0x315   :  { %v1306_v6 = vand.u32 2147483647, %v1256_v44  ;;  %v1281_v36 = vmax.f32 %v1256_v44, 0.0 }
 0x317   :  { %v1331_v19 = vsub.f32 0.0, %v1306_v6 }
 0x318   :  { %1747 = vperm.xlu1 %2020, %v1531_v25   ;;  %v1698_v58 = vpop.permute.xlu2 %1697 }
 0x319   :  { %v1375_v60 = vmul.f32 1.442695, %v1331_v19 }
 0x31a   :  { %v2876_v26 = vpop.permute.xlu0 %1662 }
 0x31b   :  { %2274 = vpow2.f32 %v1375_v60 }
 0x320   :  { %1627 = vperm.xlu1 %2020, %v1507_v40   ;;  %v1578_v22 = vpop.permute.xlu2 %1577 }
 0x321   :  { %v2275_v8 = vpop.eup %2274 }
 0x322   :  { %v1406_v55 = vadd.f32 1.0, %v2275_v8  ;;  %v1708_v29 = vpop.permute.xlu0 %1707 }
 0x324   :  { %2276 = vlog2.f32 %v1406_v55 }
 0x328   :  { %v1713_v32 = vpop.permute.xlu2 %1712 }
 0x32a   :  { %v2277_v33 = vpop.eup %2276  ;;  %v1673_v34 = vpop.permute.xlu1 %1672 }
 0x32b   :  { %v1588_v35 = vpop.permute.xlu0 %1587  ;;  %v1791_v39 = vsel %vm1489_vm4, %v2832_v45, %v1673_v34  ;;  %v1451_v28 = vmul.f32 0.6931472, %v2277_v33 }
 0x32c   :  { %v1799_v37 = vsel %vm1489_vm4, %v1588_v35, %v1713_v32  ;;  %1817 = vst.msk [vmem:[%s3017_s9 + $0x8] sm:$0xff] %vm1815_vm1, %v1791_v39 }
 0x32d   :  { %1825 = vst.msk [vmem:[%s3017_s9 + $0x48] sm:$0xff] %vm1815_vm1, %v1799_v37  ;;  %v1481_v5 = vadd.f32 %v1451_v28, %v1281_v36 }
 0x32f   :  { %v1534_v46 = vsub.f32 %v1256_v44, %v1481_v5  ;;  %v1509_v21 = vsub.f32 0.0, %v1481_v5 }
 0x330   :  { %v1593_v48 = vpop.permute.xlu2 %1592 }
 0x331   :  { %1762 = vperm.xlu1 %2020, %v1534_v46   ;;  %1637 = vperm.xlu2 %2021, %v1509_v21  }
 0x332   :  { %v1643_v45 = vpop.permute.xlu1 %1642 }
 0x333   :  { %v1810_v12 = vsel %vm1489_vm4, %v1643_v45, %v2836_v13 }
 0x334   :  { %1836 = vst.msk [vmem:[%s3017_s9 + $0xa0] sm:$0xff] %vm1815_vm1, %v1810_v12 }
 0x338   :  { %v1723_v31 = vpop.permute.xlu0 %1722  ;;  %v1728_v15 = vpop.permute.xlu2 %1727 }
 0x339   :  { %1777 = vperm.xlu1 %2020, %v1537_v52   ;;  %1787 = vperm.xlu2 %2021, %v1539_v20  }
 0x33a   :  { %v1563_v3 = vpop.permute.xlu1 %1562 }
 0x340   :  { %v1603_v50 = vpop.permute.xlu0 %1602  ;;  %v1608_v41 = vpop.permute.xlu2 %1607 }
 0x341   :  { %v1802_v13 = vsel %vm1489_vm4, %v1603_v50, %v1728_v15 }
 0x342   :  { %1828 = vst.msk [vmem:[%s3017_s9 + $0x60] sm:$0xff] %vm1815_vm1, %v1802_v13  ;;  %v1688_v51 = vpop.permute.xlu1 %1687 }
 0x343   :  { %v1794_v27 = vsel %vm1489_vm4, %v1563_v3, %v1688_v51 }
 0x344   :  { %1820 = vst.msk [vmem:[%s3017_s9 + $0x20] sm:$0xff] %vm1815_vm1, %v1794_v27 }
 0x348   :  { %v1743_v61 = vpop.permute.xlu2 %1742 }
 0x34a   :  { %v1658_v53 = vpop.permute.xlu1 %1657 }
 0x350   :  { %v1738_v52 = vpop.permute.xlu0 %1737  ;;  %v1623_v47 = vpop.permute.xlu2 %1622 }
 0x352   :  { %v1573_v30 = vpop.permute.xlu1 %1572 }
 0x353   :  { %v1796_v20 = vsel %vm1489_vm4, %v1573_v30, %v1698_v58 }
 0x354   :  { %1822 = vst.msk [vmem:[%s3017_s9 + $0x30] sm:$0xff] %vm1815_vm1, %v1796_v20 }
 0x358   :  { %v1618_v54 = vpop.permute.xlu0 %1617  ;;  %v1758_v9 = vpop.permute.xlu2 %1757 }
 0x359   :  { %v1805_v57 = vsel %vm1489_vm4, %v1618_v54, %v1743_v61 }
 0x35a   :  { %1831 = vst.msk [vmem:[%s3017_s9 + $0x78] sm:$0xff] %vm1815_vm1, %v1805_v57  ;;  %v1703_v49 = vpop.permute.xlu1 %1702 }
 0x35b   :  { %v1797_v62 = vsel %vm1489_vm4, %v1578_v22, %v1703_v49 }
 0x35c   :  { %1823 = vst.msk [vmem:[%s3017_s9 + $0x38] sm:$0xff] %vm1815_vm1, %v1797_v62 }
 0x362   :  { %v1583_v0 = vpop.permute.xlu1 %1582 }
 0x363   :  { %v1798_v1 = vsel %vm1489_vm4, %v1583_v0, %v1708_v29 }
 0x364   :  { %1824 = vst.msk [vmem:[%s3017_s9 + $0x40] sm:$0xff] %vm1815_vm1, %v1798_v1 }
 0x36a   :  { %v1753_v4 = vpop.permute.xlu0 %1752  ;;  %v1718_v7 = vpop.permute.xlu1 %1717 }
 0x36b   :  { %v1800_v42 = vsel %vm1489_vm4, %v1593_v48, %v1718_v7 }
 0x36c   :  { %1826 = vst.msk [vmem:[%s3017_s9 + $0x50] sm:$0xff] %vm1815_vm1, %v1800_v42 }
 0x372   :  { %v1633_v11 = vpop.permute.xlu0 %1632  ;;  %v1598_v17 = vpop.permute.xlu1 %1597 }
 0x373   :  { %v1808_v38 = vsel %vm1489_vm4, %v1633_v11, %v1758_v9  ;;  %v1801_v16 = vsel %vm1489_vm4, %v1598_v17, %v1723_v31 }
 0x374   :  { %1834 = vst.msk [vmem:[%s3017_s9 + $0x90] sm:$0xff] %vm1815_vm1, %v1808_v38 }
 0x375   :  { %1827 = vst.msk [vmem:[%s3017_s9 + $0x58] sm:$0xff] %vm1815_vm1, %v1801_v16 }
 0x37a   :  { %v1783_v2 = vpop.permute.xlu0 %1782  ;;  %v1733_v14 = vpop.permute.xlu1 %1732 }
 0x37b   :  { %v1813_v18 = vsel %vm1489_vm4, %v1658_v53, %v1783_v2  ;;  %v1803_v23 = vsel %vm1489_vm4, %v1608_v41, %v1733_v14 }
 0x37c   :  { %1839 = vst.msk [vmem:[%s3017_s9 + $0xb8] sm:$0xff] %vm1815_vm1, %v1813_v18 }
 0x37d   :  { %1829 = vst.msk [vmem:[%s3017_s9 + $0x68] sm:$0xff] %vm1815_vm1, %v1803_v23 }
 0x382   :  { %v1613_v43 = vpop.permute.xlu1 %1612 }
 0x383   :  { %v1804_v56 = vsel %vm1489_vm4, %v1613_v43, %v1738_v52 }
 0x384   :  { %1830 = vst.msk [vmem:[%s3017_s9 + $0x70] sm:$0xff] %vm1815_vm1, %v1804_v56 }
 0x38a   :  { %v1748_v24 = vpop.permute.xlu1 %1747 }
 0x38b   :  { %v1806_v44 = vsel %vm1489_vm4, %v1623_v47, %v1748_v24  ;;  %v1638_v63 = vpop.permute.xlu2 %1637 }
 0x38c   :  { %1832 = vst.msk [vmem:[%s3017_s9 + $0x80] sm:$0xff] %vm1815_vm1, %v1806_v44 }
 0x392   :  { %v1628_v6 = vpop.permute.xlu1 %1627 }
 0x393   :  { %v1807_v25 = vsel %vm1489_vm4, %v1628_v6, %v1753_v4  ;;  %v1788_v19 = vpop.permute.xlu2 %1787 }
 0x394   :  { %1833 = vst.msk [vmem:[%s3017_s9 + $0x88] sm:$0xff] %vm1815_vm1, %v1807_v25  ;;  %v1814_v60 = vsel %vm1489_vm4, %v2876_v26, %v1788_v19 }
 0x395   :  { %1840 = vst.msk [vmem:[%s3017_s9 + $0xc0] sm:$0xff] %vm1815_vm1, %v1814_v60 }
 0x3a3   :  { %v1763_v58 = vpop.permute.xlu1 %1762 }
 0x3a4   :  { %v1809_v40 = vsel %vm1489_vm4, %v1638_v63, %v1763_v58 }
 0x3a5   :  { %1835 = vst.msk [vmem:[%s3017_s9 + $0x98] sm:$0xff] %vm1815_vm1, %v1809_v40 }
 0x3ab   :  { %v1778_v8 = vpop.permute.xlu1 %1777 }
 0x3ac   :  { %v1812_v22 = vsel %vm1489_vm4, %v2859_v10, %v1778_v8 }
 0x3ad   :  { %1838 = vst.msk [vmem:[%s3017_s9 + $0xb0] sm:$0xff] %vm1815_vm1, %v1812_v22 }

</bundles_post_ra>
